<compile_context>
chip_gen: v5e
topology: v5e:2x2
jax: 0.10.0
libtpu: 0.0.40
codegen_flags: <defaults>
</compile_context>

<pallas_src>
import jax
import jax.numpy as jnp
from jax.experimental import pallas as pl
from jax.experimental.pallas import tpu as pltpu


# ---------------------------------------------------------------------------
# helpers
# ---------------------------------------------------------------------------
def _round_up(x, m):
    return -(-x // m) * m


def _block_diag(a, b):
    m, n = a.shape
    p, q = b.shape
    top = jnp.concatenate([a, jnp.zeros((m, q), a.dtype)], axis=1)
    bot = jnp.concatenate([jnp.zeros((p, n), b.dtype), b], axis=1)
    return jnp.concatenate([top, bot], axis=0)


# ---------------------------------------------------------------------------
# one-time parameter fusion (hoisted out of the forward path)
# ---------------------------------------------------------------------------
def fuse_params(params, *, bn_eps=1e-5, compute_dtype=jnp.bfloat16):
    """Fold eval-mode BN into fc1, stack both decoders (layer 1 stacked,
    layers 2..4 block-diagonal), fold every bias into its weight matrix via a
    homogeneous ones-row, pad the stacked output dim to a multiple of 8, and
    cast to the MXU streaming dtype.  Call ONCE; reuse the result every step."""

    def _bn_affine(p):
        s = p["gamma"] * jax.lax.rsqrt(p["var"] + bn_eps)
        return s, p["beta"] - p["mean"] * s

    s1, sh1 = _bn_affine(params["bn_resnet"])
    s2, sh2 = _bn_affine(params["bn_doppler"])
    scale = jnp.concatenate([s1, s2])          # (2F,)
    shift = jnp.concatenate([sh1, sh2])        # (2F,)

    sd, rd = params["seat"], params["resp"]
    seat_out = sd["w4"].shape[0]
    resp_out = rd["w4"].shape[0]
    n_out = seat_out + resp_out
    n_out_pad = _round_up(n_out, 8)

    # layer 1: stack both decoders along the output axis, fold in the BN affine
    w1 = jnp.concatenate([sd["w1"], rd["w1"]], axis=0)   # (128, 2F)
    b1 = jnp.concatenate([sd["b1"], rd["b1"]])           # (128,)
    w1f = w1 * scale[None, :]
    b1f = b1 + w1 @ shift
    # layers 2..4: block-diagonal so the two decoders stay independent
    w2 = _block_diag(sd["w2"], rd["w2"])                 # (64, 128)
    b2 = jnp.concatenate([sd["b2"], rd["b2"]])
    w3 = _block_diag(sd["w3"], rd["w3"])                 # (32, 64)
    b3 = jnp.concatenate([sd["b3"], rd["b3"]])
    w4 = _block_diag(sd["w4"], rd["w4"])                 # (n_out, 32)
    b4 = jnp.concatenate([sd["b4"], rd["b4"]])

    def aug(w, b, keep_ones_row):
        # bias as an extra column; optional extra row that regenerates the
        # homogeneous "1" coordinate (ReLU(1)=1 so it survives every layer).
        wb = jnp.concatenate([w, b[:, None]], axis=1)
        if keep_ones_row:
            ones_row = jnp.zeros((1, wb.shape[1]), wb.dtype).at[0, -1].set(1.0)
            wb = jnp.concatenate([wb, ones_row], axis=0)
        return wb

    w1a = aug(w1f, b1f, True)                                  # (129, 2F+1)
    w2a = aug(w2,  b2,  True)                                   # (65, 129)
    w3a = aug(w3,  b3,  True)                                   # (33, 65)
    w4a = jnp.pad(aug(w4, b4, False), ((0, n_out_pad - n_out), (0, 0)))  # (n_out_pad, 33)

    cast = lambda a: a.astype(compute_dtype)
    return {"w1": cast(w1a), "w2": cast(w2a), "w3": cast(w3a), "w4": cast(w4a)}


# ---------------------------------------------------------------------------
# fused kernel: 4 chained MXU matmuls, batch on the lane axis, f32 ReLU epilogue.
# x: (2F+1, tile_b) with a trailing ones-row; weights carry the folded biases.
# ---------------------------------------------------------------------------
def _head_kernel(x_ref, w1_ref, w2_ref, w3_ref, w4_ref, o_ref):
    h = jnp.dot(w1_ref[...], x_ref[...], preferred_element_type=jnp.float32)
    h = jnp.maximum(h, 0.0).astype(w2_ref.dtype)
    h = jnp.dot(w2_ref[...], h, preferred_element_type=jnp.float32)
    h = jnp.maximum(h, 0.0).astype(w3_ref.dtype)
    h = jnp.dot(w3_ref[...], h, preferred_element_type=jnp.float32)
    h = jnp.maximum(h, 0.0).astype(w4_ref.dtype)
    y = jnp.dot(w4_ref[...], h, preferred_element_type=jnp.float32)
    o_ref[...] = y.astype(o_ref.dtype)


# ---------------------------------------------------------------------------
# forward wrapper (jit this together with the feature producers)
# ---------------------------------------------------------------------------
def combined_one_decoder_forward(feat_resnet, feat_doppler, fused_w, *,
                                 seat_out, resp_out, tile_b=2048):
    """feat_resnet/feat_doppler: (B, feature_dim) backbone outputs.
    fused_w: output of fuse_params (computed once at init).
    Returns (seat_pred, resp_pred) with shapes (B, seat_out), (B, resp_out)."""
    B, _ = feat_resnet.shape
    w1, w2, w3, w4 = fused_w["w1"], fused_w["w2"], fused_w["w3"], fused_w["w4"]
    dt = w1.dtype
    kin = w1.shape[1]            # 2F + 1 (homogeneous coordinate)
    n_out_pad = w4.shape[0]

    # lane-dense activations: batch on the lane axis, ones-row for folded biases.
    # TODO(synk): ideally the (external) backbones would emit feature-major
    # (F, B) activations so this transpose never touches HBM; under a shared
    # jit XLA fuses the concat/transpose/pad with the producer.
    x = jnp.concatenate(
        [feat_resnet, feat_doppler, jnp.ones((B, 1), feat_resnet.dtype)], axis=1)
    x = x.T.astype(dt)                                  # (2F+1, B)

    bp = _round_up(B, 128)                              # pad batch only to 128
    if bp != B:
        x = jnp.pad(x, ((0, 0), (0, bp - B)))

    # tile: multiple of 128, >=2 grid steps whenever the batch allows it
    # (keeps both v7x TensorCores busy), capped at tile_b to bound VMEM.
    tile_b = _round_up(max(tile_b, 128), 128)
    tile = min(tile_b, max(128, _round_up(pl.cdiv(bp, 2), 128)))
    grid = pl.cdiv(bp, tile)

    full = lambda i: (0, 0)                             # weights: resident
    lane = lambda i: (0, i)                             # activations: tile batch

    out = pl.pallas_call(
        _head_kernel,
        out_shape=jax.ShapeDtypeStruct((n_out_pad, bp), jnp.float32),
        grid_spec=pltpu.PrefetchScalarGridSpec(
            num_scalar_prefetch=0,
            grid=(grid,),
            in_specs=[
                pl.BlockSpec((kin, tile), lane),
                pl.BlockSpec(w1.shape, full),
                pl.BlockSpec(w2.shape, full),
                pl.BlockSpec(w3.shape, full),
                pl.BlockSpec(w4.shape, full),
            ],
            out_specs=pl.BlockSpec((n_out_pad, tile), lane),
        ),
        compiler_params=pltpu.CompilerParams(
            dimension_semantics=("parallel",)),
    )(x, w1, w2, w3, w4)

    seat_pred = out[:seat_out, :B].T
    resp_pred = out[seat_out:seat_out + resp_out, :B].T
    return seat_pred, resp_pred


# ---------------------------------------------------------------------------
# deterministic init matching the PyTorch module's layer shapes
# (weights stored PyTorch-style as (out_features, in_features))
# ---------------------------------------------------------------------------
def init_params(key, feature_dim, seat_output_dim, resp_output_dim):
    def linear(k, fan_in, fan_out):
        kw, kb = jax.random.split(k)
        bound = 1.0 / jnp.sqrt(fan_in)
        w = jax.random.uniform(kw, (fan_out, fan_in), jnp.float32, -bound, bound)
        b = jax.random.uniform(kb, (fan_out,), jnp.float32, -bound, bound)
        return w, b

    def decoder(k, in_dim, out_dim):
        dims = [in_dim, 64, 32, 16, out_dim]
        p = {}
        for idx in range(4):
            k, sub = jax.random.split(k)
            p[f"w{idx + 1}"], p[f"b{idx + 1}"] = linear(sub, dims[idx], dims[idx + 1])
        return p

    def bn(k, dim):
        kg, kb, km, kv = jax.random.split(k, 4)
        return {
            "gamma": jax.random.uniform(kg, (dim,), jnp.float32, 0.5, 1.5),
            "beta": jax.random.uniform(kb, (dim,), jnp.float32, -0.5, 0.5),
            "mean": jax.random.normal(km, (dim,), jnp.float32),
            "var": jax.random.uniform(kv, (dim,), jnp.float32, 0.5, 2.0),
        }

    k1, k2, k3, k4 = jax.random.split(key, 4)
    return {
        "bn_resnet": bn(k1, feature_dim),
        "bn_doppler": bn(k2, feature_dim),
        "seat": decoder(k3, 2 * feature_dim, seat_output_dim),
        "resp": decoder(k4, 2 * feature_dim, resp_output_dim),
    }


# ---------------------------------------------------------------------------
# pure-JAX reference (same math as the PyTorch forward, eval-mode BN)
# ---------------------------------------------------------------------------
def reference_forward(feat_resnet, feat_doppler, params, bn_eps=1e-5):
    def bn(x, p):
        return (x - p["mean"]) / jnp.sqrt(p["var"] + bn_eps) * p["gamma"] + p["beta"]

    combined = jnp.concatenate(
        [bn(feat_resnet, params["bn_resnet"]),
         bn(feat_doppler, params["bn_doppler"])], axis=1)

    def mlp(x, p):
        h = x
        for i in (1, 2, 3):
            h = jnp.maximum(h @ p[f"w{i}"].T + p[f"b{i}"], 0.0)
        return h @ p["w4"].T + p["b4"]

    return mlp(combined, params["seat"]), mlp(combined, params["resp"])


if __name__ == "__main__":
    key = jax.random.PRNGKey(0)
    batch, feature_dim = 260, 16          # batch deliberately not a 128-multiple
    seat_output_dim, resp_output_dim = 5, 8

    k1, k2, kp = jax.random.split(key, 3)
    feat_resnet = jax.random.normal(k1, (batch, feature_dim), jnp.float32)
    feat_doppler = jax.random.normal(k2, (batch, feature_dim), jnp.float32)
    params = init_params(kp, feature_dim, seat_output_dim, resp_output_dim)

    # one-time parameter fusion (hoisted out of the per-call path)
    fused_bf16 = fuse_params(params, compute_dtype=jnp.bfloat16)   # fast path
    fused_f32 = fuse_params(params, compute_dtype=jnp.float32)     # exact path

    @jax.jit
    def fwd(fr, fd, fw):
        return combined_one_decoder_forward(
            fr, fd, fw, seat_out=seat_output_dim, resp_out=resp_output_dim)

    seat_ref, resp_ref = reference_forward(feat_resnet, feat_doppler, params)

    # default bf16-streaming path (f32 accumulation / epilogue)
    seat_pred, resp_pred = fwd(feat_resnet, feat_doppler, fused_bf16)
    jax.block_until_ready((seat_pred, resp_pred))
    assert seat_pred.shape == (batch, seat_output_dim)
    assert resp_pred.shape == (batch, resp_output_dim)
    assert jnp.allclose(seat_pred, seat_ref, atol=1e-1, rtol=1e-1)   # bf16 budget
    assert jnp.allclose(resp_pred, resp_ref, atol=1e-1, rtol=1e-1)

    # exact-semantics verification with f32 operands
    seat32, resp32 = fwd(feat_resnet, feat_doppler, fused_f32)
    jax.block_until_ready((seat32, resp32))
    assert jnp.allclose(seat32, seat_ref, atol=1e-4, rtol=1e-4)
    assert jnp.allclose(resp32, resp_ref, atol=1e-4, rtol=1e-4)

    print("KERNEL_OK")
</pallas_src>

<mosaic_0001>
module attributes {stable_mosaic.version = 11 : i64} {
  func.func @_head_kernel(%arg0: i32, %arg1: memref<33x256xbf16, #tpu.memory_space<vmem>>, %arg2: memref<129x33xbf16, #tpu.memory_space<vmem>>, %arg3: memref<65x129xbf16, #tpu.memory_space<vmem>>, %arg4: memref<33x65xbf16, #tpu.memory_space<vmem>>, %arg5: memref<16x33xbf16, #tpu.memory_space<vmem>>, %arg6: memref<16x256xf32, #tpu.memory_space<vmem>>) attributes {dimension_semantics = [#tpu.dimension_semantics<parallel>], iteration_bounds = array<i64: 2>, scalar_prefetch = 0 : i64, scratch_operands = 0 : i64, tpu.core_type = #tpu.core_type<tc>, window_params = [{transform_indices = @transform_0, window_bounds = array<i64: 33, 256>}, {pipeline_mode = #tpu.pipeline_mode<synchronous>, transform_indices = @transform_1, window_bounds = array<i64: 129, 33>}, {pipeline_mode = #tpu.pipeline_mode<synchronous>, transform_indices = @transform_2, window_bounds = array<i64: 65, 129>}, {pipeline_mode = #tpu.pipeline_mode<synchronous>, transform_indices = @transform_3, window_bounds = array<i64: 33, 65>}, {pipeline_mode = #tpu.pipeline_mode<synchronous>, transform_indices = @transform_4, window_bounds = array<i64: 16, 33>}, {transform_indices = @transform_5, window_bounds = array<i64: 16, 256>}]} {
    %c0 = arith.constant 0 : index
    %c0_0 = arith.constant 0 : index
    %0 = vector.load %arg2[%c0, %c0_0] : memref<129x33xbf16, #tpu.memory_space<vmem>>, vector<129x33xbf16>
    %c0_1 = arith.constant 0 : index
    %c0_2 = arith.constant 0 : index
    %1 = vector.load %arg1[%c0_1, %c0_2] : memref<33x256xbf16, #tpu.memory_space<vmem>>, vector<33x256xbf16>
    %cst = arith.constant dense<0.000000e+00> : vector<129x256xf32>
    %2 = tpu.matmul %0, %1, %cst {dimension_numbers = #tpu.dot_dimension_numbers<[1], [0], [0], [1], [0, 0, 1, 1], [], []>} : vector<129x33xbf16>, vector<33x256xbf16>, vector<129x256xf32> -> vector<129x256xf32>
    %cst_3 = arith.constant 0.000000e+00 : f32
    %3 = vector.broadcast %cst_3 : f32 to vector<129x256xf32>
    %4 = arith.maximumf %2, %3 : vector<129x256xf32>
    %5 = arith.truncf %4 : vector<129x256xf32> to vector<129x256xbf16>
    %c0_4 = arith.constant 0 : index
    %c0_5 = arith.constant 0 : index
    %6 = vector.load %arg3[%c0_4, %c0_5] : memref<65x129xbf16, #tpu.memory_space<vmem>>, vector<65x129xbf16>
    %cst_6 = arith.constant dense<0.000000e+00> : vector<65x256xf32>
    %7 = tpu.matmul %6, %5, %cst_6 {dimension_numbers = #tpu.dot_dimension_numbers<[1], [0], [0], [1], [0, 0, 1, 1], [], []>} : vector<65x129xbf16>, vector<129x256xbf16>, vector<65x256xf32> -> vector<65x256xf32>
    %cst_7 = arith.constant 0.000000e+00 : f32
    %8 = vector.broadcast %cst_7 : f32 to vector<65x256xf32>
    %9 = arith.maximumf %7, %8 : vector<65x256xf32>
    %10 = arith.truncf %9 : vector<65x256xf32> to vector<65x256xbf16>
    %c0_8 = arith.constant 0 : index
    %c0_9 = arith.constant 0 : index
    %11 = vector.load %arg4[%c0_8, %c0_9] : memref<33x65xbf16, #tpu.memory_space<vmem>>, vector<33x65xbf16>
    %cst_10 = arith.constant dense<0.000000e+00> : vector<33x256xf32>
    %12 = tpu.matmul %11, %10, %cst_10 {dimension_numbers = #tpu.dot_dimension_numbers<[1], [0], [0], [1], [0, 0, 1, 1], [], []>} : vector<33x65xbf16>, vector<65x256xbf16>, vector<33x256xf32> -> vector<33x256xf32>
    %cst_11 = arith.constant 0.000000e+00 : f32
    %13 = vector.broadcast %cst_11 : f32 to vector<33x256xf32>
    %14 = arith.maximumf %12, %13 : vector<33x256xf32>
    %15 = arith.truncf %14 : vector<33x256xf32> to vector<33x256xbf16>
    %c0_12 = arith.constant 0 : index
    %c0_13 = arith.constant 0 : index
    %16 = vector.load %arg5[%c0_12, %c0_13] : memref<16x33xbf16, #tpu.memory_space<vmem>>, vector<16x33xbf16>
    %cst_14 = arith.constant dense<0.000000e+00> : vector<16x256xf32>
    %17 = tpu.matmul %16, %15, %cst_14 {dimension_numbers = #tpu.dot_dimension_numbers<[1], [0], [0], [1], [0, 0, 1, 1], [], []>} : vector<16x33xbf16>, vector<33x256xbf16>, vector<16x256xf32> -> vector<16x256xf32>
    %c0_15 = arith.constant 0 : index
    %c0_16 = arith.constant 0 : index
    %18 = vector.load %arg6[%c0_15, %c0_16] : memref<16x256xf32, #tpu.memory_space<vmem>>, vector<16x256xf32>
    tpu.vector_store %arg6[%c0_15, %c0_16], %17 {strides = array<i32>} : memref<16x256xf32, #tpu.memory_space<vmem>>, vector<16x256xf32>,
    return
  }
  func.func @transform_0(%arg0: i32) -> (i32, i32) {
    %c0_i32 = arith.constant 0 : i32
    %c0_i32_0 = arith.constant 0 : i32
    return %c0_i32, %arg0 : i32, i32
  }
  func.func @transform_1(%arg0: i32) -> (i32, i32) {
    %c0_i32 = arith.constant 0 : i32
    %c0_i32_0 = arith.constant 0 : i32
    %c0_i32_1 = arith.constant 0 : i32
    return %c0_i32, %c0_i32_0 : i32, i32
  }
  func.func @transform_2(%arg0: i32) -> (i32, i32) {
    %c0_i32 = arith.constant 0 : i32
    %c0_i32_0 = arith.constant 0 : i32
    %c0_i32_1 = arith.constant 0 : i32
    return %c0_i32, %c0_i32_0 : i32, i32
  }
  func.func @transform_3(%arg0: i32) -> (i32, i32) {
    %c0_i32 = arith.constant 0 : i32
    %c0_i32_0 = arith.constant 0 : i32
    %c0_i32_1 = arith.constant 0 : i32
    return %c0_i32, %c0_i32_0 : i32, i32
  }
  func.func @transform_4(%arg0: i32) -> (i32, i32) {
    %c0_i32 = arith.constant 0 : i32
    %c0_i32_0 = arith.constant 0 : i32
    %c0_i32_1 = arith.constant 0 : i32
    return %c0_i32, %c0_i32_0 : i32, i32
  }
  func.func @transform_5(%arg0: i32) -> (i32, i32) {
    %c0_i32 = arith.constant 0 : i32
    %c0_i32_0 = arith.constant 0 : i32
    return %c0_i32, %arg0 : i32, i32
  }
}

</mosaic_0001>

<bundles_post_ra>
// kernel: fwd.1
= control target key start
LH: loop header
LB: loop body
LE: loop exit
PB: predicated region body
PF: predicated region fallthrough
CT: control target
= control target key end

     0   :  { %s3242_s0 = inlined_call_operand.vmem [shape: bf16[33,384], index: 0, kind: input, shape index: {}]   ;;  %s3243_s1 = inlined_call_operand.vmem [shape: bf16[129,33], index: 1, kind: input, shape index: {}]   ;;  %s3244_s2 = inlined_call_operand.vmem [shape: bf16[65,129], index: 2, kind: input, shape index: {}]   ;;  %s3245_s3 = inlined_call_operand.vmem [shape: bf16[33,65], index: 3, kind: input, shape index: {}]   ;;  %s3246_s4 = inlined_call_operand.vmem [shape: bf16[16,33], index: 4, kind: input, shape index: {}]   ;;  %s3247_s5 = inlined_call_operand.vmem [shape: f32[16,384], index: 5, kind: output, shape index: {}]  }
   0x1   :  { %3248 = sst [smem:[#allocation4_spill]] %s3242_s0 }
   0x2   :  { %s2568_s18 = smov 0   ;;  %s2570_s19 = smov 0  }
   0x3   :  { %s2572_s20 = smov 0  }
   0x4 LB: > { %s2584_s21 = sadd.s32 4294967295, %s2403_s20   ;;  %s2587_s22 = sadd.s32 1, %s2403_s20   ;;  %s2403_s20 = sphi %s2572_s20, %s3279_s20   ;;  %s2399_s19 = sphi %s2570_s19, %s3278_s19   ;;  %s2395_s18 = sphi %s2568_s18, %s3277_s18  }
   0x5   : > { %s19_s23 = ssub.s32 %s2403_s20, %s2587_s22  ;;  %s22_s24 = sadd.s32 1, %s2399_s19 }
   0x6   : > { %p20_p0 = scmp.eq.s32.totalorder %s19_s23, 0  ;;  %p29_p1 = scmp.ne.s32.totalorder %s2399_s19, %s2395_s18 }
   0x7   : > { %p30_p2 = scmp.eq.s32.totalorder %s2403_s20, 0  ;;  %p143_p3 = scmp.eq.s32.totalorder %s2584_s21, 1 }
   0x8   : > { %s2597_s25 = scalar_select %p20_p0, %s2399_s19, %s22_s24  }
   0x9   : > { %p31_p4 = por %p30_p2, %p29_p1  ;;  %p2599_p5 = por %p143_p3, %p29_p1 }
   0xa   : > { %p1744_p6 = scmp.ge.s32.totalorder %s2403_s20, 2 }
   0xc   : > { %177 = sbr.rel (%p1744_p6) target bundleno = 139 (0x8b), region = 32 }
  0x11   : > { %180 = sbr.rel (!%p31_p4) target bundleno = 139 (0x8b), region = 36  ;;  %s182_s27 = sand.u32 (%p31_p4), 1, %s2399_s19  }
  0x12   : > { %s1745_s28 = sshll.u32 (%p31_p4), %s2403_s20, 1  ;;  %s1966_s29 = smul.u32 (%p31_p4), 40, %s182_s27 }
  0x13   : > { %s186_s30 = ssub.s32 (%p31_p4), 3, %s1745_s28  ;;  %s1933_s6 = sshll.u32 (%p31_p4), %s2403_s20, 3 }
  0x14   : > { %p187_p7 = scmp.lt.s32.totalorder (%p31_p4), %s186_s30, 2  ;;  %s3250_s0 = sld [smem:[#allocation4_spill]] (%p31_p4) }
  0x15   : > { %s2614_s12 = scalar_lea.vmem (%p31_p4), [#allocation2], %s1966_s29  }
  0x16   : > { %s3281_s30 = smov (!%p187_p7, %s186_s30), 2 }
  0x17   : > { %s189_s10 = smul.u32 20, %s3281_s30  ;;  %s2612_s11 = sshll.u32 %s3281_s30, 2 }
  0x19   : > { %p1749_p8 = scmp.eq.s32.totalorder %s189_s10, 0 }
  0x1a   : > { %s2610_s9 = scalar_lea.vmem %s3250_s0, %s1933_s6   ;;  %p197_p9 = scmp.lt.u32.totalorder (!%p1749_p8), %s2612_s11, 8 }
  0x1b   : > { %196 = sbr.rel (%p1749_p8) target bundleno = 139 (0x8b), region = 40 }
  0x20   : > { %200 = sbr.rel (%p197_p9) target bundleno = 126 (0x7e), region = 44  ;;  %s2618_s13 = sand.u32 (!%p197_p9), 7, %s2612_s11  }
  0x21   : > { %p225_p10 = scmp.eq.s32.totalorder (!%p197_p9), %s2618_s13, 0  ;;  %p1750_p11 = scmp.ne.s32.totalorder (!%p197_p9), %s2618_s13, 0 }
  0x25   : > { %228 = sbr.rel (%p1750_p11) target bundleno = 77 (0x4d), region = 59  ;;  %s229_s14 = sshrl.u32 (!%p1750_p11), %s2612_s11, 3 }
  0x26   : > { %s2625_s15 = sshrl.u32 (!%p1750_p11), %s229_s14, 3 }
  0x27   : > { %p1751_p12 = scmp.le.s32.totalorder (!%p1750_p11), %s2625_s15, 0 }
  0x2a   : > { %1614 = sbr.rel (%p1751_p12) target bundleno = 60 (0x3c), region = 237  ;;  %s3251_s16 = smov (!%p1751_p12), %s2614_s12 }
  0x2b   : > { %s3252_s17 = smov (!%p1751_p12), %s2610_s9  ;;  %s2634_s23 = smov (!%p1751_p12), 0  }
  0x2c   : > { %s2636_s24 = smov (!%p1751_p12), 0  }
  0x2f LB: >> { %v240_v0 = vld [vmem:[%s2411_s17] sm:$0xff]  ;;  %v256_v1 = vld [vmem:[%s2411_s17 + $0xc] sm:$0xff]  ;;  %v272_v2 = vld [vmem:[%s2411_s17 + $0x18] sm:$0xff]  ;;  %s320_s27 = sadd.s32 1, %s2415_s23  ;;  %s234_s24 = sadd.s32 1, %s2419_s24   ;;  %s2419_s24 = sphi %s2636_s24, %s234_s24   ;;  %s2415_s23 = sphi %s2634_s23, %s3255_s23   ;;  %s2411_s17 = sphi %s3252_s17, %s3254_s17   ;;  %s2407_s16 = sphi %s3251_s16, %s3253_s16  }
  0x30   : >> { %241 = vst [vmem:[%s2407_s16] sm:$0xff] %v240_v0  ;;  %v288_v3 = vld [vmem:[%s2411_s17 + $0x24] sm:$0xff]  ;;  %v304_v4 = vld [vmem:[%s2411_s17 + $0x30] sm:$0xff]  ;;  %v306_v5 = vld [vmem:[%s2411_s17 + $0x38] sm:$0xff]  ;;  %p321_p13 = scmp.ge.s32.totalorder %s320_s27, %s2625_s15  ;;  %p233_p0 = scmp.ge.s32.totalorder %s234_s24, %s2625_s15 }
  0x31   : >> { %257 = vst [vmem:[%s2407_s16 + $0x8] sm:$0xff] %v256_v1  ;;  %v308_v6 = vld [vmem:[%s2411_s17 + $0x40] sm:$0xff]  ;;  %v310_v7 = vld [vmem:[%s2411_s17 + $0x48] sm:$0xff]  ;;  %v312_v8 = vld [vmem:[%s2411_s17 + $0x50] sm:$0xff] }
  0x32   : >> { %273 = vst [vmem:[%s2407_s16 + $0x10] sm:$0xff] %v272_v2  ;;  %s3283_s27 = smov (%p321_p13, %s320_s27), 0  ;;  %v314_v9 = vld [vmem:[%s2411_s17 + $0x58] sm:$0xff]  ;;  %v316_v10 = vld [vmem:[%s2411_s17 + $0x60] sm:$0xff]  ;;  %v318_v11 = vld [vmem:[%s2411_s17 + $0x68] sm:$0xff] }
  0x33   : >> { %289 = vst [vmem:[%s2407_s16 + $0x18] sm:$0xff] %v288_v3  ;;  %s1752_s28 = sshll.u32 %s3283_s27, 6  ;;  %s3255_s23 = smov %s3283_s27 }
  0x34   : >> { %305 = vst [vmem:[%s2407_s16 + $0x20] sm:$0xff] %v304_v4  ;;  %s325_s29 = scalar_lea.vmem %s2610_s9, %s1752_s28   ;;  %s326_s30 = scalar_lea.vmem %s2614_s12, %s1752_s28 [#allocation2]  }
  0x35   : >> { %307 = vst [vmem:[%s2407_s16 + $0x28] sm:$0xff] %v306_v5  ;;  %s3254_s17 = smov %s325_s29 }
  0x36   : >> { %309 = vst [vmem:[%s2407_s16 + $0x30] sm:$0xff] %v308_v6 }
  0x37   : >> { %311 = vst [vmem:[%s2407_s16 + $0x38] sm:$0xff] %v310_v7  ;;  %236 = sbr.rel (!%p233_p0) target bundleno = 47 (0x2f), region = 243 }
  0x38   : >> { %313 = vst [vmem:[%s2407_s16 + $0x40] sm:$0xff] %v312_v8 }
  0x39   : >> { %315 = vst [vmem:[%s2407_s16 + $0x48] sm:$0xff] %v314_v9 }
  0x3a   : >> { %317 = vst [vmem:[%s2407_s16 + $0x50] sm:$0xff] %v316_v10 }
  0x3b   : >> { %319 = vst [vmem:[%s2407_s16 + $0x58] sm:$0xff] %v318_v11  ;;  %s3253_s16 = smov %s326_s30 }
  0x3c PF: > { %s2673_s6 = sand.u32 7, %s229_s14   ;;  %s1934_s7 = sshll.u32 %s2625_s15, 6 }
  0x3d   : > { %s2677_s8 = scalar_lea.vmem %s2610_s9, %s1934_s7   ;;  %s2680_s10 = scalar_lea.vmem %s2614_s12, %s1934_s7 [#allocation2]  }
  0x3e   : > { %p1757_p1 = scmp.le.s32.totalorder %s2673_s6, 0 }
  0x3f   : > { %s3256_s24 = smov (!%p1757_p1), %s2680_s10  ;;  %s3257_s16 = smov (!%p1757_p1), %s2677_s8 }
  0x40   : > { %1628 = sbr.rel (%p1757_p1) target bundleno = 77 (0x4d), region = 248  ;;  %s2689_s17 = smov (!%p1757_p1), 0  }
  0x41   : > { %s2691_s23 = smov (!%p1757_p1), 0  }
  0x45 LB: >> { %v343_v12 = vld [vmem:[%s2427_s16] sm:$0xff]  ;;  %v345_v13 = vld [vmem:[%s2427_s16 + $0xc] sm:$0xff]  ;;  %v347_v14 = vld [vmem:[%s2427_s16 + $0x18] sm:$0xff]  ;;  %s353_s14 = sadd.s32 1, %s2431_s17  ;;  %s337_s23 = sadd.s32 1, %s2435_s23   ;;  %s2435_s23 = sphi %s2691_s23, %s337_s23   ;;  %s2431_s17 = sphi %s2689_s17, %s3258_s17   ;;  %s2427_s16 = sphi %s3257_s16, %s358_s16   ;;  %s2423_s24 = sphi %s3256_s24, %s359_s24  }
  0x46   : >> { %344 = vst [vmem:[%s2423_s24] sm:$0xff] %v343_v12  ;;  %v349_v15 = vld [vmem:[%s2427_s16 + $0x24] sm:$0xff]  ;;  %p354_p2 = scmp.ge.s32.totalorder %s353_s14, %s2673_s6  ;;  %v351_v16 = vld [vmem:[%s2427_s16 + $0x30] sm:$0xff]  ;;  %p336_p3 = scmp.ge.s32.totalorder %s337_s23, %s2673_s6 }
  0x47   : >> { %346 = vst [vmem:[%s2423_s24 + $0x8] sm:$0xff] %v345_v13 }
  0x48   : >> { %348 = vst [vmem:[%s2423_s24 + $0x10] sm:$0xff] %v347_v14  ;;  %s3285_s14 = smov (%p354_p2, %s353_s14), 0  ;;  %339 = sbr.rel (!%p336_p3) target bundleno = 69 (0x45), region = 254 }
  0x49   : >> { %350 = vst [vmem:[%s2423_s24 + $0x18] sm:$0xff] %v349_v15  ;;  %s1758_s15 = sshll.u32 %s3285_s14, 3  ;;  %s3258_s17 = smov %s3285_s14 }
  0x4a   : >> { %352 = vst [vmem:[%s2423_s24 + $0x20] sm:$0xff] %v351_v16  ;;  %s358_s16 = scalar_lea.vmem %s2677_s8, %s1758_s15   ;;  %s359_s24 = scalar_lea.vmem %s2680_s10, %s1758_s15 [#allocation2]  }
  0x4d PF: > { %362 = sbr.rel (%p225_p10) target bundleno = 126 (0x7e), region = 77  ;;  %s364_s27 = ssub.s32 (!%p225_p10), %s2612_s11, %s2618_s13 }
  0x4e   : > { %s368_s28 = sshrl.u32 (!%p225_p10), %s2612_s11, 3  ;;  %s2715_s29 = scalar_lea.vmem (!%p225_p10), %s2610_s9, %s364_s27 }
  0x4f   : > { %s2718_s30 = scalar_lea.vmem (!%p225_p10), %s2614_s12, %s364_s27 [#allocation2]  ;;  %s2722_s7 = sshrl.u32 (!%p225_p10), %s368_s28, 3 }
  0x50   : > { %p1760_p4 = scmp.le.s32.totalorder (!%p225_p10), %s2722_s7, 0 }
  0x52   : > { %1642 = sbr.rel (%p1760_p4) target bundleno = 100 (0x64), region = 259  ;;  %s3259_s6 = smov (!%p1760_p4), %s2614_s12 }
  0x53   : > { %s3260_s8 = smov (!%p1760_p4), %s2610_s9  ;;  %s2731_s10 = smov (!%p1760_p4), 0  }
  0x54   : > { %s2733_s24 = smov (!%p1760_p4), 0  }
  0x57 LB: >> { %v379_v17 = vld [vmem:[%s2443_s8] sm:$0xff]  ;;  %v395_v18 = vld [vmem:[%s2443_s8 + $0xc] sm:$0xff]  ;;  %v411_v19 = vld [vmem:[%s2443_s8 + $0x18] sm:$0xff]  ;;  %s459_s16 = sadd.s32 1, %s2447_s10  ;;  %s373_s24 = sadd.s32 1, %s2451_s24   ;;  %s2451_s24 = sphi %s2733_s24, %s373_s24   ;;  %s2447_s10 = sphi %s2731_s10, %s3263_s10   ;;  %s2443_s8 = sphi %s3260_s8, %s3262_s8   ;;  %s2439_s6 = sphi %s3259_s6, %s3261_s6  }
  0x58   : >> { %380 = vst [vmem:[%s2439_s6] sm:$0xff] %v379_v17  ;;  %v427_v20 = vld [vmem:[%s2443_s8 + $0x24] sm:$0xff]  ;;  %v443_v21 = vld [vmem:[%s2443_s8 + $0x30] sm:$0xff]  ;;  %v445_v22 = vld [vmem:[%s2443_s8 + $0x38] sm:$0xff]  ;;  %p460_p6 = scmp.ge.s32.totalorder %s459_s16, %s2722_s7  ;;  %p372_p7 = scmp.ge.s32.totalorder %s373_s24, %s2722_s7 }
  0x59   : >> { %396 = vst [vmem:[%s2439_s6 + $0x8] sm:$0xff] %v395_v18  ;;  %v447_v23 = vld [vmem:[%s2443_s8 + $0x40] sm:$0xff]  ;;  %v449_v24 = vld [vmem:[%s2443_s8 + $0x48] sm:$0xff]  ;;  %v451_v25 = vld [vmem:[%s2443_s8 + $0x50] sm:$0xff] }
  0x5a   : >> { %412 = vst [vmem:[%s2439_s6 + $0x10] sm:$0xff] %v411_v19  ;;  %s3287_s16 = smov (%p460_p6, %s459_s16), 0  ;;  %v453_v26 = vld [vmem:[%s2443_s8 + $0x58] sm:$0xff]  ;;  %v455_v27 = vld [vmem:[%s2443_s8 + $0x60] sm:$0xff]  ;;  %v457_v28 = vld [vmem:[%s2443_s8 + $0x68] sm:$0xff] }
  0x5b   : >> { %428 = vst [vmem:[%s2439_s6 + $0x18] sm:$0xff] %v427_v20  ;;  %s1761_s17 = sshll.u32 %s3287_s16, 6  ;;  %s3263_s10 = smov %s3287_s16 }
  0x5c   : >> { %444 = vst [vmem:[%s2439_s6 + $0x20] sm:$0xff] %v443_v21  ;;  %s464_s23 = scalar_lea.vmem %s2610_s9, %s1761_s17   ;;  %s465_s14 = scalar_lea.vmem %s2614_s12, %s1761_s17 [#allocation2]  }
  0x5d   : >> { %446 = vst [vmem:[%s2439_s6 + $0x28] sm:$0xff] %v445_v22  ;;  %s3262_s8 = smov %s464_s23 }
  0x5e   : >> { %448 = vst [vmem:[%s2439_s6 + $0x30] sm:$0xff] %v447_v23 }
  0x5f   : >> { %450 = vst [vmem:[%s2439_s6 + $0x38] sm:$0xff] %v449_v24  ;;  %375 = sbr.rel (!%p372_p7) target bundleno = 87 (0x57), region = 265 }
  0x60   : >> { %452 = vst [vmem:[%s2439_s6 + $0x40] sm:$0xff] %v451_v25 }
  0x61   : >> { %454 = vst [vmem:[%s2439_s6 + $0x48] sm:$0xff] %v453_v26 }
  0x62   : >> { %456 = vst [vmem:[%s2439_s6 + $0x50] sm:$0xff] %v455_v27 }
  0x63   : >> { %458 = vst [vmem:[%s2439_s6 + $0x58] sm:$0xff] %v457_v28  ;;  %s3261_s6 = smov %s465_s14 }
  0x64 PF: > { %s2770_s15 = sand.u32 7, %s368_s28   ;;  %s1936_s27 = sshll.u32 %s2722_s7, 6 }
  0x65   : > { %s2774_s17 = scalar_lea.vmem %s2610_s9, %s1936_s27   ;;  %s2777_s0 = scalar_lea.vmem %s2614_s12, %s1936_s27 [#allocation2]  }
  0x66   : > { %p1766_p8 = scmp.le.s32.totalorder %s2770_s15, 0 }
  0x67   : > { %s3264_s24 = smov (!%p1766_p8), %s2777_s0  ;;  %s3265_s6 = smov (!%p1766_p8), %s2774_s17 }
  0x68   : > { %1656 = sbr.rel (%p1766_p8) target bundleno = 117 (0x75), region = 270  ;;  %s2786_s8 = smov (!%p1766_p8), 0  }
  0x69   : > { %s2788_s10 = smov (!%p1766_p8), 0  }
  0x6d LB: >> { %v482_v29 = vld [vmem:[%s2459_s6] sm:$0xff]  ;;  %v484_v30 = vld [vmem:[%s2459_s6 + $0xc] sm:$0xff]  ;;  %v486_v31 = vld [vmem:[%s2459_s6 + $0x18] sm:$0xff]  ;;  %s492_s28 = sadd.s32 1, %s2463_s8  ;;  %s476_s10 = sadd.s32 1, %s2467_s10   ;;  %s2467_s10 = sphi %s2788_s10, %s476_s10   ;;  %s2463_s8 = sphi %s2786_s8, %s3266_s8   ;;  %s2459_s6 = sphi %s3265_s6, %s497_s6   ;;  %s2455_s24 = sphi %s3264_s24, %s498_s24  }
  0x6e   : >> { %483 = vst [vmem:[%s2455_s24] sm:$0xff] %v482_v29  ;;  %v488_v32 = vld [vmem:[%s2459_s6 + $0x24] sm:$0xff]  ;;  %p493_p9 = scmp.ge.s32.totalorder %s492_s28, %s2770_s15  ;;  %v490_v33 = vld [vmem:[%s2459_s6 + $0x30] sm:$0xff]  ;;  %p475_p10 = scmp.ge.s32.totalorder %s476_s10, %s2770_s15 }
  0x6f   : >> { %485 = vst [vmem:[%s2455_s24 + $0x8] sm:$0xff] %v484_v30 }
  0x70   : >> { %487 = vst [vmem:[%s2455_s24 + $0x10] sm:$0xff] %v486_v31  ;;  %s3289_s28 = smov (%p493_p9, %s492_s28), 0  ;;  %478 = sbr.rel (!%p475_p10) target bundleno = 109 (0x6d), region = 276 }
  0x71   : >> { %489 = vst [vmem:[%s2455_s24 + $0x18] sm:$0xff] %v488_v32  ;;  %s1767_s7 = sshll.u32 %s3289_s28, 3  ;;  %s3266_s8 = smov %s3289_s28 }
  0x72   : >> { %491 = vst [vmem:[%s2455_s24 + $0x20] sm:$0xff] %v490_v33  ;;  %s497_s6 = scalar_lea.vmem %s2774_s17, %s1767_s7   ;;  %s498_s24 = scalar_lea.vmem %s2777_s0, %s1767_s7 [#allocation2]  }
  0x75 PF: > { %s2533_s16 = smov 1  }
  0x76   : > { %s499_s23 = sshll.u32 %s2533_s16, %s2618_s13 }
  0x77   : > { %s1769_s14 = sadd.s32 4294967295, %s499_s23 }
  0x78   : > { %v509_v34 = vld [vmem:[%s2715_s29] sm:%s1769_s14]  ;;  %v511_v35 = vld [vmem:[%s2715_s29 + $0xc] sm:%s1769_s14] }
  0x79   : > { %510 = vst [vmem:[%s2718_s30] sm:%s1769_s14] %v509_v34  ;;  %v513_v36 = vld [vmem:[%s2715_s29 + $0x18] sm:%s1769_s14] }
  0x7a   : > { %512 = vst [vmem:[%s2718_s30 + $0x8] sm:%s1769_s14] %v511_v35  ;;  %v515_v37 = vld [vmem:[%s2715_s29 + $0x24] sm:%s1769_s14] }
  0x7b   : > { %514 = vst [vmem:[%s2718_s30 + $0x10] sm:%s1769_s14] %v513_v36  ;;  %v517_v38 = vld [vmem:[%s2715_s29 + $0x30] sm:%s1769_s14] }
  0x7c   : > { %516 = vst [vmem:[%s2718_s30 + $0x18] sm:%s1769_s14] %v515_v37 }
  0x7d   : > { %518 = vst [vmem:[%s2718_s30 + $0x20] sm:%s1769_s14] %v517_v38 }
  0x7e PF: > { %p1770_p11 = scmp.ge.u32.totalorder %s2612_s11, 8 }
  0x7f   : > { %s2534_s0 = smov (!%p1770_p11), 1  }
  0x80   : > { %203 = sbr.rel (%p1770_p11) target bundleno = 139 (0x8b), region = 48  ;;  %s204_s13 = sshll.u32 (!%p1770_p11), %s2534_s0, %s2612_s11 }
  0x81   : > { %s1771_s29 = sadd.s32 (!%p1770_p11), 4294967295, %s204_s13 }
  0x85   : > { %v214_v39 = vld [vmem:[%s2610_s9] sm:%s1771_s29]  ;;  %v216_v40 = vld [vmem:[%s2610_s9 + $0xc] sm:%s1771_s29] }
  0x86   : > { %215 = vst [vmem:[%s2614_s12] sm:%s1771_s29] %v214_v39  ;;  %v218_v41 = vld [vmem:[%s2610_s9 + $0x18] sm:%s1771_s29] }
  0x87   : > { %217 = vst [vmem:[%s2614_s12 + $0x8] sm:%s1771_s29] %v216_v40  ;;  %v220_v42 = vld [vmem:[%s2610_s9 + $0x24] sm:%s1771_s29] }
  0x88   : > { %219 = vst [vmem:[%s2614_s12 + $0x10] sm:%s1771_s29] %v218_v41  ;;  %v222_v43 = vld [vmem:[%s2610_s9 + $0x30] sm:%s1771_s29] }
  0x89   : > { %221 = vst [vmem:[%s2614_s12 + $0x18] sm:%s1771_s29] %v220_v42 }
  0x8a   : > { %223 = vst [vmem:[%s2614_s12 + $0x20] sm:%s1771_s29] %v222_v43 }
  0x8b PF: > { %p1772_p12 = scmp.ge.s32.totalorder %s2403_s20, 1  ;;  %p521_p13 = scmp.lt.s32.totalorder %s2403_s20, 3 }
  0x8d   : > { %p522_p0 = pnand %p1772_p12, %p521_p13 }
  0x8e   : > { %s528_s11 = sand.u32 (!%p522_p0), 1, %s2395_s18  }
  0x8f   : > { %525 = sbr.rel (%p522_p0) target bundleno = 1190 (0x4a6), region = 102  ;;  %s1773_s27 = sshll.u32 (!%p522_p0), %s528_s11, 5 }
  0x90   : > { %s1967_s30 = smul.u32 (!%p522_p0), 40, %s528_s11  ;;  %s3000_s17 = scalar_lea.vmem (!%p522_p0), [#allocation3], %s1773_s27  }
  0x92   : > { %s530_s15 = scalar_lea.vmem (!%p522_p0), [#allocation2], %s1967_s30 }
  0x94   : > { %vm683_vm0 = vcmask 1040384   ;;  %v586_v44 = vld [vmem:[%s530_s15 + $0x20] sm:$0x11]  ;;  %v2535_v47 = vmov 0   ;;  %v1816_v50 = vld [vmem:[%s530_s15 + $0x10] sm:$0xf] }
  0x95   : > { %v643_v45 = vunpack.c.l.b16 %v586_v44  ;;  %v644_v46 = vunpack.c.h.b16 %v586_v44  ;;  %v2834_v48 = vsel %vm683_vm0, 65535, %v2535_v47  ;;  %v1949_v52 = vld [vmem:[%s530_s15 + $0x14] sm:$0xf0]  ;;  %v1948_v53 = vld [vmem:[%s530_s15 + $0x14] sm:$0xf]  ;;  %vm655_vm1 = vcmask 269312  }
  0x96   : > { %v1818_v54 = vld [vmem:[%s530_s15 + $0x18] sm:$0xf0]  ;;  %v1817_v57 = vor.u32 %v1949_v52, %v1816_v50  ;;  %v1808_v58 = vld [vmem:[%s530_s15] sm:$0xf]  ;;  %v1947_v60 = vld [vmem:[%s530_s15 + $0x4] sm:$0xf0] }
  0x97   : > { %v649_v49 = vpack.c.b16 %v643_v45, %v643_v45  ;;  %v650_v51 = vpack.c.b16 %v644_v46, %v644_v46  ;;  %v1821_v59 = vor.u32 %v1948_v53, %v1818_v54  ;;  %v1946_v61 = vld [vmem:[%s530_s15 + $0x4] sm:$0xf]  ;;  %v1810_v62 = vld [vmem:[%s530_s15 + $0x8] sm:$0xf0]  ;;  %v1809_v63 = vor.u32 %v1947_v60, %v1808_v58  ;;  %v1941_v4 = vld [vmem:[%s3243_s1 + $0x18] sm:$0xff]  ;;  %s1903_s18 = sshll.u32 (%p2599_p5), %s2584_s21, 1 }
  0x98   : > { %v1813_v0 = vor.u32 %v1946_v61, %v1810_v62  ;;  %v1938_v1 = vld [vmem:[%s3243_s1] sm:$0xff]  ;;  %v1939_v2 = vld [vmem:[%s3243_s1 + $0x8] sm:$0xff]  ;;  %v1940_v3 = vld [vmem:[%s3243_s1 + $0x10] sm:$0xff]  ;;  %vm901_vm2 = vcmask 7168   ;;  %vm1101_vm3 = vcmask 531456   ;;  %s1961_s11 = sshll.u32 (%p2599_p5), %s2584_s21, 4 }
  0x99   : > { %v687_v55 = vand.u32 %v2834_v48, %v649_v49  ;;  %v690_v56 = vand.u32 %v2834_v48, %v650_v51  ;;  %v1942_v5 = vld [vmem:[%s3243_s1 + $0x20] sm:$0xff]  ;;  %v1943_v6 = vld [vmem:[%s3243_s1 + $0x28] sm:$0xff]  ;;  %v1944_v7 = vld [vmem:[%s3243_s1 + $0x30] sm:$0xff]  ;;  %s1235_s24 = ssub.s32 (%p2599_p5), 3, %s1903_s18  ;;  %s3013_s10 = scalar_lea.vmem (%p2599_p5), %s3247_s5, %s1961_s11  }
  0x9a   : > { %v1945_v8 = vld [vmem:[%s3243_s1 + $0x38] sm:$0xff]  ;;  %v581_v9 = vld [vmem:[%s3243_s1 + $0x40] sm:$0x1]  ;;  %p1236_p1 = scmp.lt.s32.totalorder (%p2599_p5), %s1235_s24, 2 }
  0x9b   : > { %697 = vmatpush.bf16.msra.mxu0 %v687_v55  ;;  %750 = vmatpush.bf16.msra.mxu1 %v690_v56  ;;  %v620_v10 = vunpack.c.l.b16 %v581_v9 }
  0x9d   : > { %v629_v11 = vpack.c.b16 %v620_v10, %v620_v10 }
  0x9f   : > { %698 = vmatpush.bf16.msra.mxu0 %v1817_v57  ;;  %751 = vmatpush.bf16.msra.mxu1 %v1821_v59 }
  0xa3   : > { %699 = vmatpush.bf16.msra.mxu0 %v1809_v63  ;;  %752 = vmatpush.bf16.msra.mxu1 %v1813_v0 }
  0xa6   : > { %1822 = vmatmul.msk.bf16.vlgmr.msra.gmra.mxu0 %vm655_vm1, %v1938_v1  ;;  %1831 = vmatmul.msk.bf16.vlgmr.msra.gmra.mxu1 %vm655_vm1, %v1938_v1 }
  0xb6   : > { %1823 = vmatmul.msk.bf16.gmra.mxu0 %vm655_vm1, %v1939_v2  ;;  %1832 = vmatmul.msk.bf16.gmra.mxu1 %vm655_vm1, %v1939_v2 }
  0xc6   : > { %1824 = vmatmul.msk.bf16.gmra.mxu0 %vm655_vm1, %v1940_v3  ;;  %1833 = vmatmul.msk.bf16.gmra.mxu1 %vm655_vm1, %v1940_v3 }
  0xd6   : > { %1825 = vmatmul.msk.bf16.gmra.mxu0 %vm655_vm1, %v1941_v4  ;;  %1834 = vmatmul.msk.bf16.gmra.mxu1 %vm655_vm1, %v1941_v4 }
  0xe6   : > { %1826 = vmatmul.msk.bf16.gmra.mxu0 %vm655_vm1, %v1942_v5  ;;  %1835 = vmatmul.msk.bf16.gmra.mxu1 %vm655_vm1, %v1942_v5 }
  0xf6   : > { %1827 = vmatmul.msk.bf16.gmra.mxu0 %vm655_vm1, %v1943_v6  ;;  %1836 = vmatmul.msk.bf16.gmra.mxu1 %vm655_vm1, %v1943_v6 }
 0x106   : > { %1828 = vmatmul.msk.bf16.gmra.mxu0 %vm655_vm1, %v1944_v7  ;;  %1837 = vmatmul.msk.bf16.gmra.mxu1 %vm655_vm1, %v1944_v7 }
 0x116   : > { %1829 = vmatmul.msk.bf16.gmra.mxu0 %vm655_vm1, %v1945_v8  ;;  %1838 = vmatmul.msk.bf16.gmra.mxu1 %vm655_vm1, %v1945_v8 }
 0x123   : > { %v701_v12 = vpop.f32.mrf.mxu0  ;;  %v754_v13 = vpop.f32.mrf.mxu1 }
 0x124   : > { %v798_v16 = vmax.f32 %v701_v12, 0.0  ;;  %v799_v33 = vmax.f32 %v754_v13, 0.0 }
 0x126   : > { %1830 = vmatmul.msk.bf16.gmra.mxu0 %vm655_vm1, %v629_v11  ;;  %1839 = vmatmul.msk.bf16.gmra.mxu1 %vm655_vm1, %v629_v11 }
 0x12b   : > { %v703_v14 = vpop.f32.mrf.mxu0  ;;  %v756_v15 = vpop.f32.mrf.mxu1 }
 0x12c   : > { %v800_v17 = vmax.f32 %v703_v14, 0.0  ;;  %v801_v34 = vmax.f32 %v756_v15, 0.0 }
 0x12e   : > { %v2883_v18 = vpack.c.bf16 %v800_v17, %v798_v16  ;;  %v2889_v37 = vpack.c.bf16 %v801_v34, %v799_v33 }
 0x133   : > { %v706_v19 = vpop.f32.mrf.mxu0  ;;  %v759_v20 = vpop.f32.mrf.mxu1 }
 0x134   : > { %v802_v23 = vmax.f32 %v706_v19, 0.0  ;;  %v803_v43 = vmax.f32 %v759_v20, 0.0 }
 0x13b   : > { %v708_v21 = vpop.f32.mrf.mxu0  ;;  %v761_v22 = vpop.f32.mrf.mxu1 }
 0x13c   : > { %v804_v24 = vmax.f32 %v708_v21, 0.0  ;;  %v805_v44 = vmax.f32 %v761_v22, 0.0  ;;  %v1950_v21 = vld [vmem:[%s3244_s2 + $0x4] sm:$0xf]  ;;  %v1844_v22 = vld [vmem:[%s3244_s2 + $0x8] sm:$0xf0] }
 0x13e   : > { %v2885_v25 = vpack.c.bf16 %v804_v24, %v802_v23  ;;  %v2895_v47 = vpack.c.bf16 %v805_v44, %v803_v43  ;;  %v1852_v43 = vld [vmem:[%s3244_s2 + $0x18] sm:$0xf0]  ;;  %v1842_v44 = vld [vmem:[%s3244_s2] sm:$0xf] }
 0x143   : > { %v711_v26 = vpop.f32.mrf.mxu0  ;;  %v764_v27 = vpop.f32.mrf.mxu1 }
 0x144   : > { %v806_v30 = vmax.f32 %v711_v26, 0.0  ;;  %v807_v51 = vmax.f32 %v764_v27, 0.0 }
 0x14b   : > { %v713_v28 = vpop.f32.mrf.mxu0  ;;  %v766_v29 = vpop.f32.mrf.mxu1 }
 0x14c   : > { %v808_v31 = vmax.f32 %v713_v28, 0.0  ;;  %v809_v52 = vmax.f32 %v766_v29, 0.0  ;;  %v2906_v29 = vor.u32 %v1950_v21, %v1844_v22 }
 0x14e   : > { %v2887_v32 = vpack.c.bf16 %v808_v31, %v806_v30  ;;  %v2897_v55 = vpack.c.bf16 %v809_v52, %v807_v51  ;;  %v1956_v52 = vld [vmem:[%s3244_s2 + $0x34] sm:$0xf] }
 0x153   : > { %v716_v35 = vpop.f32.mrf.mxu0  ;;  %v769_v36 = vpop.f32.mrf.mxu1 }
 0x154   : > { %v810_v40 = vmax.f32 %v716_v35, 0.0  ;;  %v811_v58 = vmax.f32 %v769_v36, 0.0 }
 0x15b   : > { %v718_v38 = vpop.f32.mrf.mxu0  ;;  %v771_v39 = vpop.f32.mrf.mxu1 }
 0x15c   : > { %v812_v41 = vmax.f32 %v718_v38, 0.0  ;;  %v813_v59 = vmax.f32 %v771_v39, 0.0 }
 0x15e   : > { %v2891_v42 = vpack.c.bf16 %v812_v41, %v810_v40  ;;  %v839_v62 = vpack.c.bf16 %v813_v59, %v811_v58  ;;  %v1952_v41 = vld [vmem:[%s3244_s2 + $0x14] sm:$0xf] }
 0x163   : > { %v721_v45 = vpop.f32.mrf.mxu0  ;;  %v2893_v46 = vpop.f32.mrf.mxu1 }
 0x164   : > { %v814_v27 = vmax.f32 %v721_v45, 0.0  ;;  %v815_v36 = vmax.f32 %v2893_v46, 0.0  ;;  %v1860_v46 = vld [vmem:[%s3244_s2 + $0x28] sm:$0xf0] }
 0x16b   : > { %v723_v49 = vpop.f32.mrf.mxu0  ;;  %v776_v50 = vpop.f32.mrf.mxu1 }
 0x16c   : > { %v816_v17 = vmax.f32 %v723_v49, 0.0  ;;  %v817_v38 = vmax.f32 %v776_v50, 0.0  ;;  %v1953_v49 = vld [vmem:[%s3244_s2 + $0x14] sm:$0xf0] }
 0x16e   : > { %v840_v30 = vpack.c.bf16 %v816_v17, %v814_v27  ;;  %v841_v40 = vpack.c.bf16 %v817_v38, %v815_v36 }
 0x173   : > { %v726_v53 = vpop.f32.mrf.mxu0  ;;  %v779_v54 = vpop.f32.mrf.mxu1 }
 0x174   : > { %v818_v15 = vmax.f32 %v726_v53, 0.0  ;;  %v819_v31 = vmax.f32 %v779_v54, 0.0 }
 0x17b   : > { %v728_v56 = vpop.f32.mrf.mxu0  ;;  %v781_v57 = vpop.f32.mrf.mxu1 }
 0x17c   : > { %v820_v10 = vmax.f32 %v728_v56, 0.0  ;;  %v821_v33 = vmax.f32 %v781_v57, 0.0  ;;  %v1955_v56 = vld [vmem:[%s3244_s2 + $0x24] sm:$0xf0] }
 0x17e   : > { %v842_v20 = vpack.c.bf16 %v820_v10, %v818_v15  ;;  %v843_v39 = vpack.c.bf16 %v821_v33, %v819_v31 }
 0x183   : > { %v731_v60 = vpop.f32.mrf.mxu0  ;;  %v784_v61 = vpop.f32.mrf.mxu1 }
 0x184   : > { %v822_v8 = vmax.f32 %v731_v60, 0.0  ;;  %v823_v23 = vmax.f32 %v784_v61, 0.0  ;;  %v858_v61 = vld [vmem:[%s3244_s2 + $0x40] sm:$0x11] }
 0x18b   : > { %v733_v63 = vpop.f32.mrf.mxu0  ;;  %v786_v0 = vpop.f32.mrf.mxu1 }
 0x18c   : > { %v824_v6 = vmax.f32 %v733_v63, 0.0  ;;  %v825_v24 = vmax.f32 %v786_v0, 0.0  ;;  %v1866_v63 = vld [vmem:[%s3244_s2 + $0x30] sm:$0xf]  ;;  %v1957_v0 = vld [vmem:[%s3244_s2 + $0x34] sm:$0xf0] }
 0x18e   : > { %v844_v11 = vpack.c.bf16 %v824_v6, %v822_v8  ;;  %v845_v34 = vpack.c.bf16 %v825_v24, %v823_v23 }
 0x193   : > { %v736_v1 = vpop.f32.mrf.mxu0  ;;  %v789_v2 = vpop.f32.mrf.mxu1 }
 0x194   : > { %v826_v4 = vmax.f32 %v736_v1, 0.0  ;;  %v827_v12 = vmax.f32 %v789_v2, 0.0  ;;  %v1867_v2 = vor.u32 %v1957_v0, %v1866_v63 }
 0x19b   : > { %v738_v3 = vpop.f32.mrf.mxu0  ;;  %v791_v9 = vpop.f32.mrf.mxu1 }
 0x19c   : > { %v828_v5 = vmax.f32 %v738_v3, 0.0  ;;  %v829_v14 = vmax.f32 %v791_v9, 0.0  ;;  %v884_v3 = vunpack.c.l.b16 %v858_v61 }
 0x19e   : > { %v846_v7 = vpack.c.bf16 %v828_v5, %v826_v4  ;;  %v847_v26 = vpack.c.bf16 %v829_v14, %v827_v12  ;;  %v894_v4 = vpack.c.b16 %v884_v3, %v884_v3  ;;  %v1959_v3 = vld [vmem:[%s3245_s3 + $0x8] sm:$0xff] }
 0x1a0   : > { %923 = vmatpush.bf16.msra.mxu2 %v846_v7 }
 0x1a3   : > { %v741_v13 = vpop.f32.mrf.mxu0  ;;  %v794_v51 = vpop.f32.mrf.mxu1 }
 0x1a4   : > { %v830_v16 = vmax.f32 %v741_v13, 0.0  ;;  %924 = vmatpush.bf16.msra.mxu2 %v844_v11  ;;  %v831_v53 = vmax.f32 %v794_v51, 0.0 }
 0x1a6   : > { %v848_v19 = vpack.c.bf16 %v830_v16, %v830_v16  ;;  %v849_v59 = vpack.c.bf16 %v831_v53, %v831_v53 }
 0x1a8   : > { %925 = vmatpush.bf16.msra.mxu2 %v842_v20  ;;  %v918_v28 = vand.u32 %v848_v19, %v2834_v48  ;;  %v921_v60 = vand.u32 %v849_v59, %v2834_v48 }
 0x1aa   : > { %963 = vmatpush.bf16.msra.mxu3 %v918_v28 }
 0x1ab   : > { %v743_v35 = vpop.f32.mrf.mxu0  ;;  %v796_v54 = vpop.f32.mrf.mxu1 }
 0x1ac   : > { %926 = vmatpush.bf16.msra.mxu2 %v840_v30 }
 0x1ad   : > { %1872 = vmatmul.msk.bf16.vlgmr.msra.gmra.mxu3 %vm901_vm2, %v2906_v29 }
 0x1ae   : > { %989 = vmatpush.bf16.msrb.mxu3 %v847_v26 }
 0x1b0   : > { %927 = vmatpush.bf16.msra.mxu2 %v2891_v42  ;;  %v1951_v42 = vld [vmem:[%s3244_s2 + $0x4] sm:$0xf0] }
 0x1b1   : > { %v1843_v45 = vor.u32 %v1951_v42, %v1842_v44 }
 0x1b2   : > { %990 = vmatpush.bf16.msrb.mxu3 %v845_v34 }
 0x1b4   : > { %928 = vmatpush.bf16.msra.mxu2 %v2887_v32  ;;  %v1855_v32 = vor.u32 %v1952_v41, %v1852_v43 }
 0x1b6   : > { %991 = vmatpush.bf16.msrb.mxu3 %v843_v39 }
 0x1b8   : > { %929 = vmatpush.bf16.msra.mxu2 %v2885_v25  ;;  %v1954_v25 = vld [vmem:[%s3244_s2 + $0x24] sm:$0xf] }
 0x1b9   : > { %v1863_v50 = vor.u32 %v1954_v25, %v1860_v46 }
 0x1ba   : > { %992 = vmatpush.bf16.msrb.mxu3 %v841_v40 }
 0x1bc   : > { %930 = vmatpush.bf16.msra.mxu2 %v2883_v18  ;;  %v1850_v18 = vld [vmem:[%s3244_s2 + $0x10] sm:$0xf] }
 0x1bd   : > { %1873 = vmatmul.msk.bf16.gmra.mxu3 %vm901_vm2, %v1855_v32 }
 0x1be   : > { %993 = vmatpush.bf16.msrb.mxu3 %v839_v62  ;;  %v885_v62 = vunpack.c.h.b16 %v858_v61 }
 0x1bf   : > { %931 = vmatmul.bf16.vlgmr.msra.gmra.mxu2 %v1843_v45 }
 0x1c0   : > { %1029 = vmatpush.bf16.msrb.mxu2 %v921_v60  ;;  %v895_v1 = vpack.c.b16 %v885_v62, %v885_v62 }
 0x1c2   : > { %994 = vmatpush.bf16.msrb.mxu3 %v2897_v55  ;;  %v1858_v55 = vld [vmem:[%s3244_s2 + $0x20] sm:$0xf] }
 0x1c3   : > { %v1859_v58 = vor.u32 %v1955_v56, %v1858_v55 }
 0x1c6   : > { %995 = vmatpush.bf16.msrb.mxu3 %v2895_v47  ;;  %v1851_v47 = vor.u32 %v1953_v49, %v1850_v18 }
 0x1ca   : > { %996 = vmatpush.bf16.msrb.mxu3 %v2889_v37  ;;  %v1868_v37 = vld [vmem:[%s3244_s2 + $0x38] sm:$0xf0] }
 0x1cb   : > { %v1871_v57 = vor.u32 %v1956_v52, %v1868_v37 }
 0x1cd   : > { %1874 = vmatmul.msk.bf16.gmra.mxu3 %vm901_vm2, %v1863_v50 }
 0x1cf   : > { %936 = vmatmul.bf16.gmra.mxu2 %v1851_v47 }
 0x1dd   : > { %1875 = vmatmul.msk.bf16.gmra.mxu3 %vm901_vm2, %v1871_v57 }
 0x1df   : > { %941 = vmatmul.bf16.gmra.mxu2 %v1859_v58 }
 0x1ed   : > { %1876 = vmatmul.msk.bf16.gmra.mxu3 %vm901_vm2, %v895_v1 }
 0x1ef   : > { %946 = vmatmul.bf16.gmra.mxu2 %v1867_v2 }
 0x1fd   : > { %997 = vmatmul.bf16.vlgmr.msrb.gmra.mxu3 %v1843_v45 }
 0x1ff   : > { %951 = vmatmul.bf16.gmra.mxu2 %v894_v4 }
 0x20d   : > { %1002 = vmatmul.bf16.gmra.mxu3 %v1851_v47 }
 0x20f   : > { %1877 = vmatmul.msk.bf16.vlgmr.msrb.gmra.mxu2 %vm901_vm2, %v2906_v29 }
 0x21d   : > { %1007 = vmatmul.bf16.gmra.mxu3 %v1859_v58 }
 0x21f   : > { %1878 = vmatmul.msk.bf16.gmra.mxu2 %vm901_vm2, %v1855_v32 }
 0x22d   : > { %1012 = vmatmul.bf16.gmra.mxu3 %v1867_v2 }
 0x22f   : > { %1879 = vmatmul.msk.bf16.gmra.mxu2 %vm901_vm2, %v1863_v50 }
 0x230   : > { %v965_v5 = vpop.f32.mrf.mxu3 }
 0x238   : > { %v967_v6 = vpop.f32.mrf.mxu3 }
 0x23d   : > { %1017 = vmatmul.bf16.gmra.mxu3 %v894_v4 }
 0x23f   : > { %1880 = vmatmul.msk.bf16.gmra.mxu2 %vm901_vm2, %v1871_v57  ;;  %v1958_v57 = vld [vmem:[%s3245_s3] sm:$0xff] }
 0x240   : > { %v970_v7 = vpop.f32.mrf.mxu3 }
 0x242   : > { %v932_v8 = vpop.f32.mrf.mxu2 }
 0x243   : > { %v966_v9 = vadd.f32 %v965_v5, %v932_v8 }
 0x245   : > { %v1055_v13 = vmax.f32 %v966_v9, 0.0 }
 0x248   : > { %v972_v10 = vpop.f32.mrf.mxu3 }
 0x24a   : > { %v934_v11 = vpop.f32.mrf.mxu2 }
 0x24b   : > { %v968_v12 = vadd.f32 %v967_v6, %v934_v11 }
 0x24d   : > { %v1057_v14 = vmax.f32 %v968_v12, 0.0 }
 0x24f   : > { %1881 = vmatmul.msk.bf16.gmra.mxu2 %vm901_vm2, %v895_v1  ;;  %v1073_v15 = vpack.c.bf16 %v1057_v14, %v1055_v13 }
 0x250   : > { %v975_v16 = vpop.f32.mrf.mxu3 }
 0x252   : > { %v937_v17 = vpop.f32.mrf.mxu2 }
 0x253   : > { %v971_v20 = vadd.f32 %v970_v7, %v937_v17 }
 0x255   : > { %v1059_v23 = vmax.f32 %v971_v20, 0.0 }
 0x258   : > { %v977_v19 = vpop.f32.mrf.mxu3 }
 0x25a   : > { %v939_v21 = vpop.f32.mrf.mxu2 }
 0x25b   : > { %v973_v22 = vadd.f32 %v972_v10, %v939_v21  ;;  %v1087_v10 = vld [vmem:[%s3245_s3 + $0x10] sm:$0x1] }
 0x25c   : > { %v1097_v11 = vunpack.c.l.b16 %v1087_v10 }
 0x25d   : > { %v1061_v24 = vmax.f32 %v973_v22, 0.0 }
 0x25e   : > { %v1100_v14 = vpack.c.b16 %v1097_v11, %v1097_v11 }
 0x25f   : > { %v1075_v26 = vpack.c.bf16 %v1061_v24, %v1059_v23 }
 0x260   : > { %v980_v27 = vpop.f32.mrf.mxu3 }
 0x262   : > { %v942_v28 = vpop.f32.mrf.mxu2 }
 0x263   : > { %v976_v18 = vadd.f32 %v975_v16, %v942_v28 }
 0x265   : > { %v1063_v51 = vmax.f32 %v976_v18, 0.0 }
 0x268   : > { %v982_v29 = vpop.f32.mrf.mxu3 }
 0x26a   : > { %v944_v30 = vpop.f32.mrf.mxu2 }
 0x26b   : > { %v978_v32 = vadd.f32 %v977_v19, %v944_v30 }
 0x26d   : > { %v1065_v50 = vmax.f32 %v978_v32, 0.0 }
 0x26f   : > { %v1077_v37 = vpack.c.bf16 %v1065_v50, %v1063_v51 }
 0x270   : > { %v985_v31 = vpop.f32.mrf.mxu3 }
 0x272   : > { %v947_v33 = vpop.f32.mrf.mxu2 }
 0x273   : > { %v981_v43 = vadd.f32 %v980_v27, %v947_v33 }
 0x275   : > { %v1067_v49 = vmax.f32 %v981_v43, 0.0 }
 0x278   : > { %v987_v34 = vpop.f32.mrf.mxu3 }
 0x27a   : > { %v949_v35 = vpop.f32.mrf.mxu2 }
 0x27b   : > { %v983_v40 = vadd.f32 %v982_v29, %v949_v35 }
 0x27d   : > { %v1069_v45 = vmax.f32 %v983_v40, 0.0 }
 0x27f   : > { %v1079_v47 = vpack.c.bf16 %v1069_v45, %v1067_v49 }
 0x280   : > { %v998_v36 = vpop.f32.mrf.mxu3 }
 0x282   : > { %v952_v38 = vpop.f32.mrf.mxu2 }
 0x283   : > { %v986_v39 = vadd.f32 %v985_v31, %v952_v38 }
 0x285   : > { %v1071_v41 = vmax.f32 %v986_v39, 0.0 }
 0x287   : > { %v1081_v44 = vpack.c.bf16 %v1071_v41, %v1071_v41 }
 0x288   : > { %v1000_v42 = vpop.f32.mrf.mxu3 }
 0x289   : > { %v1112_v25 = vand.u32 %v1081_v44, %v2834_v48 }
 0x28a   : > { %v954_v46 = vpop.f32.mrf.mxu2 }
 0x28b   : > { %1120 = vmatpush.bf16.msrb.mxu0 %v1112_v25 }
 0x28f   : > { %1121 = vmatpush.bf16.msrb.mxu0 %v1079_v47 }
 0x290   : > { %v1003_v52 = vpop.f32.mrf.mxu3 }
 0x292   : > { %v1031_v53 = vpop.f32.mrf.mxu2 }
 0x293   : > { %v1032_v54 = vadd.f32 %v1031_v53, %v998_v36  ;;  %1122 = vmatpush.bf16.msrb.mxu0 %v1077_v37 }
 0x295   : > { %v1056_v59 = vmax.f32 %v1032_v54, 0.0 }
 0x297   : > { %1123 = vmatpush.bf16.msrb.mxu0 %v1075_v26 }
 0x298   : > { %v1005_v55 = vpop.f32.mrf.mxu3 }
 0x29a   : > { %v1033_v56 = vpop.f32.mrf.mxu2 }
 0x29b   : > { %v1034_v58 = vadd.f32 %v1033_v56, %v1000_v42  ;;  %1124 = vmatpush.bf16.msrb.mxu0 %v1073_v15 }
 0x29d   : > { %v1058_v60 = vmax.f32 %v1034_v58, 0.0 }
 0x29e   : > { %1890 = vmatmul.msk.bf16.vlgmr.msrb.gmra.mxu0 %vm1101_vm3, %v1958_v57 }
 0x29f   : > { %v1074_v61 = vpack.c.bf16 %v1058_v60, %v1056_v59 }
 0x2a0   : > { %v1008_v62 = vpop.f32.mrf.mxu3 }
 0x2a2   : > { %v1036_v63 = vpop.f32.mrf.mxu2 }
 0x2a3   : > { %v1037_v1 = vadd.f32 %v1036_v63, %v1003_v52  ;;  %v1960_v52 = vld [vmem:[%s3246_s4] sm:$0xff] }
 0x2a5   : > { %v1060_v5 = vmax.f32 %v1037_v1, 0.0 }
 0x2a8   : > { %v1010_v0 = vpop.f32.mrf.mxu3 }
 0x2aa   : > { %v1038_v2 = vpop.f32.mrf.mxu2 }
 0x2ab   : > { %v1039_v4 = vadd.f32 %v1038_v2, %v1005_v55 }
 0x2ad   : > { %v1062_v6 = vmax.f32 %v1039_v4, 0.0 }
 0x2ae   : > { %1891 = vmatmul.msk.bf16.gmra.mxu0 %vm1101_vm3, %v1959_v3 }
 0x2af   : > { %v1076_v7 = vpack.c.bf16 %v1062_v6, %v1060_v5 }
 0x2b0   : > { %v1013_v8 = vpop.f32.mrf.mxu3 }
 0x2b2   : > { %v1041_v9 = vpop.f32.mrf.mxu2 }
 0x2b3   : > { %v1042_v31 = vadd.f32 %v1041_v9, %v1008_v62 }
 0x2b5   : > { %v1064_v36 = vmax.f32 %v1042_v31, 0.0 }
 0x2b8   : > { %v1015_v12 = vpop.f32.mrf.mxu3 }
 0x2ba   : > { %v1043_v13 = vpop.f32.mrf.mxu2 }
 0x2bb   : > { %v1044_v27 = vadd.f32 %v1043_v13, %v1010_v0 }
 0x2bd   : > { %v1066_v34 = vmax.f32 %v1044_v27, 0.0 }
 0x2be   : > { %1892 = vmatmul.msk.bf16.gmra.mxu0 %vm1101_vm3, %v1100_v14 }
 0x2bf   : > { %v1078_v38 = vpack.c.bf16 %v1066_v34, %v1064_v36 }
 0x2c0   : > { %v1018_v15 = vpop.f32.mrf.mxu3 }
 0x2c2   : > { %v1046_v16 = vpop.f32.mrf.mxu2 }
 0x2c3   : > { %v1047_v24 = vadd.f32 %v1046_v16, %v1013_v8 }
 0x2c5   : > { %v1068_v33 = vmax.f32 %v1047_v24, 0.0 }
 0x2c8   : > { %v1020_v17 = vpop.f32.mrf.mxu3 }
 0x2ca   : > { %v1048_v19 = vpop.f32.mrf.mxu2 }
 0x2cb   : > { %v1049_v22 = vadd.f32 %v1048_v19, %v1015_v12 }
 0x2cd   : > { %v1070_v28 = vmax.f32 %v1049_v22, 0.0 }
 0x2cf   : > { %v1080_v35 = vpack.c.bf16 %v1070_v28, %v1068_v33 }
 0x2d2   : > { %v1051_v20 = vpop.f32.mrf.mxu2 }
 0x2d3   : > { %v1052_v21 = vadd.f32 %v1051_v20, %v1018_v15 }
 0x2d5   : > { %v1072_v23 = vmax.f32 %v1052_v21, 0.0 }
 0x2d7   : > { %v1082_v26 = vpack.c.bf16 %v1072_v23, %v1072_v23 }
 0x2d9   : > { %v1115_v29 = vand.u32 %v1082_v26, %v2834_v48 }
 0x2da   : > { %v1053_v30 = vpop.f32.mrf.mxu2 }
 0x2db   : > { %1143 = vmatpush.bf16.msrb.mxu1 %v1115_v29 }
 0x2df   : > { %1144 = vmatpush.bf16.msrb.mxu1 %v1080_v35 }
 0x2e3   : > { %1145 = vmatpush.bf16.msrb.mxu1 %v1078_v38 }
 0x2e7   : > { %1146 = vmatpush.bf16.msrb.mxu1 %v1076_v7 }
 0x2eb   : > { %1147 = vmatpush.bf16.msrb.mxu1 %v1074_v61 }
 0x2ee   : > { %1893 = vmatmul.msk.bf16.vlgmr.msrb.gmra.mxu1 %vm1101_vm3, %v1958_v57 }
 0x2fe   : > { %1894 = vmatmul.msk.bf16.gmra.mxu1 %vm1101_vm3, %v1959_v3 }
 0x30e   : > { %1895 = vmatmul.msk.bf16.gmra.mxu1 %vm1101_vm3, %v1100_v14 }
 0x31b   : > { %v1126_v39 = vpop.f32.mrf.mxu0 }
 0x31c   : > { %v1163_v18 = vmax.f32 %v1126_v39, 0.0 }
 0x323   : > { %v1128_v40 = vpop.f32.mrf.mxu0 }
 0x324   : > { %v1165_v49 = vmax.f32 %v1128_v40, 0.0 }
 0x326   : > { %v1173_v51 = vpack.c.bf16 %v1165_v49, %v1163_v18 }
 0x32b   : > { %v1131_v41 = vpop.f32.mrf.mxu0 }
 0x32c   : > { %v1167_v32 = vmax.f32 %v1131_v41, 0.0 }
 0x333   : > { %v1133_v43 = vpop.f32.mrf.mxu0 }
 0x334   : > { %v1169_v45 = vmax.f32 %v1133_v43, 0.0 }
 0x336   : > { %v1175_v50 = vpack.c.bf16 %v1169_v45, %v1167_v32 }
 0x33b   : > { %v1136_v44 = vpop.f32.mrf.mxu0 }
 0x33c   : > { %v1171_v42 = vmax.f32 %v1136_v44, 0.0 }
 0x33e   : > { %v1177_v25 = vpack.c.bf16 %v1171_v42, %v1171_v42 }
 0x340   : > { %v1190_v46 = vand.u32 %v1177_v25, %v2834_v48 }
 0x342   : > { %1200 = vmatpush.bf16.msra.mxu3 %v1190_v46 }
 0x343   : > { %v1138_v47 = vpop.f32.mrf.mxu0 }
 0x346   : > { %1201 = vmatpush.bf16.msra.mxu3 %v1175_v50 }
 0x34a   : > { %1202 = vmatpush.bf16.msra.mxu3 %v1173_v51 }
 0x34d   : > { %1900 = vmatmul.msk.bf16.vlgmr.msra.gmra.mxu3 %vm655_vm1, %v1960_v52 }
 0x36b   : > { %v1149_v37 = vpop.f32.mrf.mxu1 }
 0x36c   : > { %v1164_v1 = vmax.f32 %v1149_v37, 0.0 }
 0x373   : > { %v1151_v53 = vpop.f32.mrf.mxu1 }
 0x374   : > { %v1166_v63 = vmax.f32 %v1151_v53, 0.0 }
 0x376   : > { %v1174_v2 = vpack.c.bf16 %v1166_v63, %v1164_v1 }
 0x37b   : > { %v1154_v54 = vpop.f32.mrf.mxu1 }
 0x37c   : > { %v1168_v61 = vmax.f32 %v1154_v54, 0.0 }
 0x383   : > { %v1156_v55 = vpop.f32.mrf.mxu1 }
 0x384   : > { %v1170_v59 = vmax.f32 %v1156_v55, 0.0 }
 0x386   : > { %v1176_v0 = vpack.c.bf16 %v1170_v59, %v1168_v61 }
 0x38b   : > { %v1159_v56 = vpop.f32.mrf.mxu1 }
 0x38c   : > { %v1172_v57 = vmax.f32 %v1159_v56, 0.0 }
 0x38e   : > { %v1178_v58 = vpack.c.bf16 %v1172_v57, %v1172_v57 }
 0x390   : > { %v1193_v60 = vand.u32 %v1178_v58, %v2834_v48 }
 0x392   : > { %1214 = vmatpush.bf16.msrb.mxu3 %v1193_v60 }
 0x393   : > { %v1161_v62 = vpop.f32.mrf.mxu1 }
 0x396   : > { %1215 = vmatpush.bf16.msrb.mxu3 %v1176_v0 }
 0x39a   : > { %1216 = vmatpush.bf16.msrb.mxu3 %v1174_v2 }
 0x39d   : > { %1901 = vmatmul.msk.bf16.vlgmr.msrb.gmra.mxu3 %vm655_vm1, %v1960_v52 }
 0x3d0   : > { %v1204_v3 = vpop.f32.mrf.mxu3 }
 0x3d1   : > { %1223 = vst [vmem:[%s3000_s17] sm:$0xff] %v1204_v3 }
 0x3d8   : > { %v1206_v48 = vpop.f32.mrf.mxu3 }
 0x3d9   : > { %1225 = vst [vmem:[%s3000_s17 + $0x10] sm:$0xff] %v1206_v48 }
 0x420   : > { %v1218_v4 = vpop.f32.mrf.mxu3 }
 0x421   : > { %1224 = vst [vmem:[%s3000_s17 + $0x8] sm:$0xff] %v1218_v4 }
 0x425   : > { %1233 = sbr.rel (!%p2599_p5) target bundleno = 1190 (0x4a6), region = 110 }
 0x428   : > { %v1220_v5 = vpop.f32.mrf.mxu3 }
 0x429   : > { %1226 = vst [vmem:[%s3000_s17 + $0x18] sm:$0xff] %v1220_v5 }
 0x42a   : > { %s3291_s24 = smov (!%p1236_p1, %s1235_s24), 2 }
 0x42b   : > { %s1904_s28 = sshll.u32 %s3291_s24, 4  ;;  %s3015_s7 = sshll.u32 %s3291_s24, 3 }
 0x42c   : > { %p1908_p2 = scmp.eq.s32.totalorder %s1904_s28, 0 }
 0x42d   : > { %p1246_p3 = scmp.lt.u32.totalorder (!%p1908_p2), %s3015_s7, 8 }
 0x42e   : > { %1245 = sbr.rel (%p1908_p2) target bundleno = 1190 (0x4a6), region = 114 }
 0x433   : > { %1249 = sbr.rel (%p1246_p3) target bundleno = 1180 (0x49c), region = 118  ;;  %s3019_s26 = sand.u32 (!%p1246_p3), 7, %s3015_s7  }
 0x434   : > { %p1268_p5 = scmp.eq.s32.totalorder (!%p1246_p3), %s3019_s26, 0  ;;  %p1909_p4 = scmp.ne.s32.totalorder (!%p1246_p3), %s3019_s26, 0 }
 0x438   : > { %1271 = sbr.rel (%p1909_p4) target bundleno = 1127 (0x467), region = 133  ;;  %s1272_s21 = sshrl.u32 (!%p1909_p4), %s3015_s7, 3 }
 0x439   : > { %s3026_s16 = sshrl.u32 (!%p1909_p4), %s1272_s21, 4 }
 0x43a   : > { %p1910_p6 = scmp.le.s32.totalorder (!%p1909_p4), %s3026_s16, 0 }
 0x43d   : > { %1670 = sbr.rel (%p1910_p6) target bundleno = 1110 (0x456), region = 281  ;;  %s3267_s23 = smov (!%p1910_p6), %s3013_s10 }
 0x43e   : > { %s3268_s14 = smov (!%p1910_p6), %s3000_s17  ;;  %s3035_s0 = smov (!%p1910_p6), 0  }
 0x43f   : > { %s3037_s13 = smov (!%p1910_p6), 0  }
 0x442 LB: >> { %v1283_v6 = vld [vmem:[%s2475_s14] sm:$0xff]  ;;  %v1285_v7 = vld [vmem:[%s2475_s14 + $0x8] sm:$0xff]  ;;  %v1287_v8 = vld [vmem:[%s2475_s14 + $0x10] sm:$0xff]  ;;  %s1347_s29 = sadd.s32 1, %s2479_s0  ;;  %s1277_s13 = sadd.s32 1, %s2483_s13   ;;  %s2483_s13 = sphi %s3037_s13, %s1277_s13   ;;  %s2479_s0 = sphi %s3035_s0, %s3271_s0   ;;  %s2475_s14 = sphi %s3268_s14, %s3270_s14   ;;  %s2471_s23 = sphi %s3267_s23, %s3269_s23  }
 0x443   : >> { %1284 = vst [vmem:[%s2471_s23] sm:$0xff] %v1283_v6  ;;  %v1317_v9 = vld [vmem:[%s2475_s14 + $0x18] sm:$0xff]  ;;  %v1319_v10 = vld [vmem:[%s2475_s14 + $0x20] sm:$0xff]  ;;  %p1348_p7 = scmp.ge.s32.totalorder %s1347_s29, %s3026_s16  ;;  %v1321_v11 = vld [vmem:[%s2475_s14 + $0x28] sm:$0xff]  ;;  %p1276_p8 = scmp.ge.s32.totalorder %s1277_s13, %s3026_s16 }
 0x444   : >> { %1286 = vst [vmem:[%s2471_s23 + $0x8] sm:$0xff] %v1285_v7  ;;  %v1323_v12 = vld [vmem:[%s2475_s14 + $0x30] sm:$0xff]  ;;  %v1325_v13 = vld [vmem:[%s2475_s14 + $0x38] sm:$0xff]  ;;  %v1327_v14 = vld [vmem:[%s2475_s14 + $0x40] sm:$0xff] }
 0x445   : >> { %1288 = vst [vmem:[%s2471_s23 + $0x10] sm:$0xff] %v1287_v8  ;;  %s3293_s29 = smov (%p1348_p7, %s1347_s29), 0  ;;  %v1329_v15 = vld [vmem:[%s2475_s14 + $0x48] sm:$0xff]  ;;  %v1331_v16 = vld [vmem:[%s2475_s14 + $0x50] sm:$0xff]  ;;  %v1333_v17 = vld [vmem:[%s2475_s14 + $0x58] sm:$0xff] }
 0x446   : >> { %1316 = vst [vmem:[%s2471_s23 + $0x18] sm:$0xff] %v1287_v8  ;;  %s1911_s30 = sshll.u32 %s3293_s29, 7  ;;  %v1335_v19 = vld [vmem:[%s2475_s14 + $0x60] sm:$0xff]  ;;  %v1337_v20 = vld [vmem:[%s2475_s14 + $0x68] sm:$0xff]  ;;  %v1339_v21 = vld [vmem:[%s2475_s14 + $0x70] sm:$0xff]  ;;  %s3271_s0 = smov %s3293_s29 }
 0x447   : >> { %1318 = vst [vmem:[%s2471_s23 + $0x20] sm:$0xff] %v1317_v9  ;;  %s1352_s15 = scalar_lea.vmem %s3000_s17, %s1911_s30 [#allocation3]   ;;  %s1353_s20 = scalar_lea.vmem %s3013_s10, %s1911_s30   ;;  %v1341_v22 = vld [vmem:[%s2475_s14 + $0x78] sm:$0xff]  ;;  %v1343_v23 = vld [vmem:[%s2475_s14 + $0x80] sm:$0xff]  ;;  %v1345_v24 = vld [vmem:[%s2475_s14 + $0x88] sm:$0xff] }
 0x448   : >> { %1320 = vst [vmem:[%s2471_s23 + $0x28] sm:$0xff] %v1319_v10  ;;  %s3270_s14 = smov %s1352_s15 }
 0x449   : >> { %1322 = vst [vmem:[%s2471_s23 + $0x30] sm:$0xff] %v1321_v11 }
 0x44a   : >> { %1324 = vst [vmem:[%s2471_s23 + $0x38] sm:$0xff] %v1323_v12 }
 0x44b   : >> { %1326 = vst [vmem:[%s2471_s23 + $0x40] sm:$0xff] %v1325_v13 }
 0x44c   : >> { %1328 = vst [vmem:[%s2471_s23 + $0x48] sm:$0xff] %v1327_v14 }
 0x44d   : >> { %1330 = vst [vmem:[%s2471_s23 + $0x50] sm:$0xff] %v1329_v15 }
 0x44e   : >> { %1332 = vst [vmem:[%s2471_s23 + $0x58] sm:$0xff] %v1331_v16 }
 0x44f   : >> { %1334 = vst [vmem:[%s2471_s23 + $0x60] sm:$0xff] %v1333_v17 }
 0x450   : >> { %1336 = vst [vmem:[%s2471_s23 + $0x68] sm:$0xff] %v1335_v19 }
 0x451   : >> { %1338 = vst [vmem:[%s2471_s23 + $0x70] sm:$0xff] %v1337_v20  ;;  %1279 = sbr.rel (!%p1276_p8) target bundleno = 1090 (0x442), region = 287 }
 0x452   : >> { %1340 = vst [vmem:[%s2471_s23 + $0x78] sm:$0xff] %v1339_v21 }
 0x453   : >> { %1342 = vst [vmem:[%s2471_s23 + $0x80] sm:$0xff] %v1341_v22 }
 0x454   : >> { %1344 = vst [vmem:[%s2471_s23 + $0x88] sm:$0xff] %v1343_v23 }
 0x455   : >> { %1346 = vst [vmem:[%s2471_s23 + $0x90] sm:$0xff] %v1345_v24  ;;  %s3269_s23 = smov %s1353_s20 }
 0x456 PF: > { %s3105_s9 = sand.u32 15, %s1272_s21   ;;  %s1962_s12 = sshll.u32 %s3026_s16, 7 }
 0x457   : > { %s3109_s27 = scalar_lea.vmem %s3000_s17, %s1962_s12 [#allocation3]   ;;  %s1360_s18 = scalar_lea.vmem %s3013_s10, %s1962_s12  }
 0x458   : > { %p1916_p9 = scmp.le.s32.totalorder %s3105_s9, 0 }
 0x459   : > { %s2485_s11 = smov (!%p1916_p9), %s1360_s18   ;;  %s2489_s24 = smov (!%p1916_p9), %s3109_s27  }
 0x45a   : > { %1684 = sbr.rel (%p1916_p9) target bundleno = 1127 (0x467), region = 292  ;;  %s2493_s6 = smov (!%p1916_p9), 0  }
 0x45b   : > { %s2497_s8 = smov (!%p1916_p9), 0  }
 0x45f LB: >> { %v1370_v26 = vld [vmem:[%s2491_s24] sm:$0xff]  ;;  %v1372_v27 = vld [vmem:[%s2491_s24 + $0x10] sm:$0xff]  ;;  %s1374_s28 = sadd.s32 1, %s2495_s6  ;;  %s1364_s8 = sadd.s32 1, %s2499_s8   ;;  %s2499_s8 = sphi %s2497_s8, %s1364_s8   ;;  %s2495_s6 = sphi %s2493_s6, %s2494_s6   ;;  %s2491_s24 = sphi %s2489_s24, %s1379_s24   ;;  %s2487_s11 = sphi %s2485_s11, %s1380_s11  }
 0x460   : >> { %1371 = vst [vmem:[%s2487_s11] sm:$0xff] %v1370_v26  ;;  %p1375_p10 = scmp.ge.s32.totalorder %s1374_s28, %s3105_s9  ;;  %p1363_p11 = scmp.ge.s32.totalorder %s1364_s8, %s3105_s9 }
 0x461   : >> { %1373 = vst [vmem:[%s2487_s11 + $0x18] sm:$0xff] %v1372_v27 }
 0x462   : >> { %s3295_s28 = smov (%p1375_p10, %s1374_s28), 0  ;;  %1366 = sbr.rel (!%p1363_p11) target bundleno = 1119 (0x45f), region = 298 }
 0x463   : >> { %s1917_s21 = sshll.u32 %s3295_s28, 3  ;;  %s2494_s6 = smov %s3295_s28  }
 0x464   : >> { %s1379_s24 = scalar_lea.vmem %s3109_s27, %s1917_s21 [#allocation3]   ;;  %s1380_s11 = scalar_lea.vmem %s1360_s18, %s1917_s21  }
 0x467 PF: > { %1383 = sbr.rel (%p1268_p5) target bundleno = 1180 (0x49c), region = 151  ;;  %s1385_s16 = ssub.s32 (!%p1268_p5), %s3015_s7, %s3019_s26 }
 0x468   : > { %s1389_s23 = sshrl.u32 (!%p1268_p5), %s3015_s7, 3  ;;  %s3123_s14 = scalar_lea.vmem (!%p1268_p5), %s3000_s17, %s1385_s16 [#allocation3] }
 0x469   : > { %s3126_s0 = scalar_lea.vmem (!%p1268_p5), %s3013_s10, %s1385_s16  ;;  %s3130_s13 = sshrl.u32 (!%p1268_p5), %s1389_s23, 4 }
 0x46a   : > { %p1919_p12 = scmp.le.s32.totalorder (!%p1268_p5), %s3130_s13, 0 }
 0x46c   : > { %1698 = sbr.rel (%p1919_p12) target bundleno = 1157 (0x485), region = 303  ;;  %s3272_s29 = smov (!%p1919_p12), %s3013_s10 }
 0x46d   : > { %s3273_s30 = smov (!%p1919_p12), %s3000_s17  ;;  %s3139_s15 = smov (!%p1919_p12), 0  }
 0x46e   : > { %s3141_s20 = smov (!%p1919_p12), 0  }
 0x471 LB: >> { %v1400_v28 = vld [vmem:[%s2507_s30] sm:$0xff]  ;;  %v1402_v29 = vld [vmem:[%s2507_s30 + $0x8] sm:$0xff]  ;;  %v1404_v30 = vld [vmem:[%s2507_s30 + $0x10] sm:$0xff]  ;;  %s1464_s9 = sadd.s32 1, %s2511_s15  ;;  %s1394_s20 = sadd.s32 1, %s2515_s20   ;;  %s2515_s20 = sphi %s3141_s20, %s1394_s20   ;;  %s2511_s15 = sphi %s3139_s15, %s3276_s15   ;;  %s2507_s30 = sphi %s3273_s30, %s3275_s30   ;;  %s2503_s29 = sphi %s3272_s29, %s3274_s29  }
 0x472   : >> { %1401 = vst [vmem:[%s2503_s29] sm:$0xff] %v1400_v28  ;;  %v1434_v31 = vld [vmem:[%s2507_s30 + $0x18] sm:$0xff]  ;;  %v1436_v33 = vld [vmem:[%s2507_s30 + $0x20] sm:$0xff]  ;;  %p1465_p13 = scmp.ge.s32.totalorder %s1464_s9, %s3130_s13  ;;  %v1438_v34 = vld [vmem:[%s2507_s30 + $0x28] sm:$0xff]  ;;  %p1393_p0 = scmp.ge.s32.totalorder %s1394_s20, %s3130_s13 }
 0x473   : >> { %1403 = vst [vmem:[%s2503_s29 + $0x8] sm:$0xff] %v1402_v29  ;;  %v1440_v35 = vld [vmem:[%s2507_s30 + $0x30] sm:$0xff]  ;;  %v1442_v36 = vld [vmem:[%s2507_s30 + $0x38] sm:$0xff]  ;;  %v1444_v38 = vld [vmem:[%s2507_s30 + $0x40] sm:$0xff] }
 0x474   : >> { %1405 = vst [vmem:[%s2503_s29 + $0x10] sm:$0xff] %v1404_v30  ;;  %s3297_s9 = smov (%p1465_p13, %s1464_s9), 0  ;;  %v1446_v39 = vld [vmem:[%s2507_s30 + $0x48] sm:$0xff]  ;;  %v1448_v40 = vld [vmem:[%s2507_s30 + $0x50] sm:$0xff]  ;;  %v1450_v41 = vld [vmem:[%s2507_s30 + $0x58] sm:$0xff] }
 0x475   : >> { %1433 = vst [vmem:[%s2503_s29 + $0x18] sm:$0xff] %v1404_v30  ;;  %s1920_s12 = sshll.u32 %s3297_s9, 7  ;;  %v1452_v43 = vld [vmem:[%s2507_s30 + $0x60] sm:$0xff]  ;;  %v1454_v44 = vld [vmem:[%s2507_s30 + $0x68] sm:$0xff]  ;;  %v1456_v42 = vld [vmem:[%s2507_s30 + $0x70] sm:$0xff]  ;;  %s3276_s15 = smov %s3297_s9 }
 0x476   : >> { %1435 = vst [vmem:[%s2503_s29 + $0x20] sm:$0xff] %v1434_v31  ;;  %s1469_s27 = scalar_lea.vmem %s3000_s17, %s1920_s12 [#allocation3]   ;;  %s1470_s18 = scalar_lea.vmem %s3013_s10, %s1920_s12   ;;  %v1458_v32 = vld [vmem:[%s2507_s30 + $0x78] sm:$0xff]  ;;  %v1460_v45 = vld [vmem:[%s2507_s30 + $0x80] sm:$0xff]  ;;  %v1462_v25 = vld [vmem:[%s2507_s30 + $0x88] sm:$0xff] }
 0x477   : >> { %1437 = vst [vmem:[%s2503_s29 + $0x28] sm:$0xff] %v1436_v33  ;;  %s3275_s30 = smov %s1469_s27 }
 0x478   : >> { %1439 = vst [vmem:[%s2503_s29 + $0x30] sm:$0xff] %v1438_v34 }
 0x479   : >> { %1441 = vst [vmem:[%s2503_s29 + $0x38] sm:$0xff] %v1440_v35 }
 0x47a   : >> { %1443 = vst [vmem:[%s2503_s29 + $0x40] sm:$0xff] %v1442_v36 }
 0x47b   : >> { %1445 = vst [vmem:[%s2503_s29 + $0x48] sm:$0xff] %v1444_v38 }
 0x47c   : >> { %1447 = vst [vmem:[%s2503_s29 + $0x50] sm:$0xff] %v1446_v39 }
 0x47d   : >> { %1449 = vst [vmem:[%s2503_s29 + $0x58] sm:$0xff] %v1448_v40 }
 0x47e   : >> { %1451 = vst [vmem:[%s2503_s29 + $0x60] sm:$0xff] %v1450_v41 }
 0x47f   : >> { %1453 = vst [vmem:[%s2503_s29 + $0x68] sm:$0xff] %v1452_v43 }
 0x480   : >> { %1455 = vst [vmem:[%s2503_s29 + $0x70] sm:$0xff] %v1454_v44  ;;  %1396 = sbr.rel (!%p1393_p0) target bundleno = 1137 (0x471), region = 309 }
 0x481   : >> { %1457 = vst [vmem:[%s2503_s29 + $0x78] sm:$0xff] %v1456_v42 }
 0x482   : >> { %1459 = vst [vmem:[%s2503_s29 + $0x80] sm:$0xff] %v1458_v32 }
 0x483   : >> { %1461 = vst [vmem:[%s2503_s29 + $0x88] sm:$0xff] %v1460_v45 }
 0x484   : >> { %1463 = vst [vmem:[%s2503_s29 + $0x90] sm:$0xff] %v1462_v25  ;;  %s3274_s29 = smov %s1470_s18 }
 0x485 PF: > { %s3209_s11 = sand.u32 15, %s1389_s23   ;;  %s1964_s24 = sshll.u32 %s3130_s13, 7 }
 0x486   : > { %s3213_s6 = scalar_lea.vmem %s3000_s17, %s1964_s24 [#allocation3]   ;;  %s1477_s8 = scalar_lea.vmem %s3013_s10, %s1964_s24  }
 0x487   : > { %p1925_p1 = scmp.le.s32.totalorder %s3209_s11, 0 }
 0x488   : > { %s2517_s28 = smov (!%p1925_p1), %s1477_s8   ;;  %s2521_s21 = smov (!%p1925_p1), %s3213_s6  }
 0x489   : > { %1712 = sbr.rel (%p1925_p1) target bundleno = 1174 (0x496), region = 314  ;;  %s2525_s16 = smov (!%p1925_p1), 0  }
 0x48a   : > { %s2529_s20 = smov (!%p1925_p1), 0  }
 0x48e LB: >> { %v1487_v46 = vld [vmem:[%s2523_s21] sm:$0xff]  ;;  %v1489_v18 = vld [vmem:[%s2523_s21 + $0x10] sm:$0xff]  ;;  %s1491_s23 = sadd.s32 1, %s2527_s16  ;;  %s1481_s20 = sadd.s32 1, %s2531_s20   ;;  %s2531_s20 = sphi %s2529_s20, %s1481_s20   ;;  %s2527_s16 = sphi %s2525_s16, %s2526_s16   ;;  %s2523_s21 = sphi %s2521_s21, %s1496_s21   ;;  %s2519_s28 = sphi %s2517_s28, %s1497_s28  }
 0x48f   : >> { %1488 = vst [vmem:[%s2519_s28] sm:$0xff] %v1487_v46  ;;  %p1492_p2 = scmp.ge.s32.totalorder %s1491_s23, %s3209_s11  ;;  %p1480_p3 = scmp.ge.s32.totalorder %s1481_s20, %s3209_s11 }
 0x490   : >> { %1490 = vst [vmem:[%s2519_s28 + $0x18] sm:$0xff] %v1489_v18 }
 0x491   : >> { %s3299_s23 = smov (%p1492_p2, %s1491_s23), 0  ;;  %1483 = sbr.rel (!%p1480_p3) target bundleno = 1166 (0x48e), region = 320 }
 0x492   : >> { %s1926_s13 = sshll.u32 %s3299_s23, 3  ;;  %s2526_s16 = smov %s3299_s23  }
 0x493   : >> { %s1496_s21 = scalar_lea.vmem %s3213_s6, %s1926_s13 [#allocation3]   ;;  %s1497_s28 = scalar_lea.vmem %s1477_s8, %s1926_s13  }
 0x496 PF: > { %s2536_s29 = smov 1  }
 0x497   : > { %s1498_s30 = sshll.u32 %s2536_s29, %s3019_s26 }
 0x498   : > { %s1928_s15 = sadd.s32 4294967295, %s1498_s30 }
 0x499   : > { %v1508_v49 = vld [vmem:[%s3123_s14] sm:%s1928_s15]  ;;  %v1510_v50 = vld [vmem:[%s3123_s14 + $0x10] sm:%s1928_s15] }
 0x49a   : > { %1509 = vst [vmem:[%s3126_s0] sm:%s1928_s15] %v1508_v49 }
 0x49b   : > { %1511 = vst [vmem:[%s3126_s0 + $0x18] sm:%s1928_s15] %v1510_v50 }
 0x49c PF: > { %p1929_p5 = scmp.ge.u32.totalorder %s3015_s7, 8 }
 0x49d   : > { %s2537_s9 = smov (!%p1929_p5), 1  }
 0x49e   : > { %1252 = sbr.rel (%p1929_p5) target bundleno = 1190 (0x4a6), region = 122  ;;  %s1253_s12 = sshll.u32 (!%p1929_p5), %s2537_s9, %s3015_s7 }
 0x49f   : > { %s1930_s27 = sadd.s32 (!%p1929_p5), 4294967295, %s1253_s12 }
 0x4a3   : > { %v1263_v47 = vld [vmem:[%s3000_s17] sm:%s1930_s27]  ;;  %v1265_v51 = vld [vmem:[%s3000_s17 + $0x10] sm:%s1930_s27] }
 0x4a4   : > { %1264 = vst [vmem:[%s3013_s10] sm:%s1930_s27] %v1263_v47 }
 0x4a5   : > { %1266 = vst [vmem:[%s3013_s10 + $0x18] sm:%s1930_s27] %v1265_v51 }
 0x4a6 PF: > { %p12_p4 = scmp.ge.s32.totalorder %s2587_s22, 4   ;;  %s3277_s18 = smov %s2399_s19 }
 0x4a7   : > { %s3278_s19 = smov %s2597_s25  ;;  %s3279_s20 = smov %s2587_s22 }
 0x4a8   :  { %14 = sbr.rel (!%p12_p4) target bundleno = 4 (0x4), region = 331 }

</bundles_post_ra>
